<compile_context>
chip_gen: v5e
topology: v5e:2x2
jax: 0.10.0
libtpu: 0.0.40
codegen_flags: <defaults>
</compile_context>

<pallas_src>
import jax
import jax.numpy as jnp
from jax.experimental import pallas as pl
from jax.experimental.pallas import tpu as pltpu

K_IN = 28 * 28      # 784, kept un-padded (full-K block)
H1 = 512
H2 = 512
NCLASS = 10
C_PAD = 128         # class dim padded to one full lane group
NEG_BIAS = -1e30    # padded-class bias -> softmax prob exactly 0 (logits stay f32)

TM_MAX = 512        # large-batch rows/step cap (v6e roofline sweet spot, v5e-VMEM safe)
TM_SINGLE = 128     # batches up to this run as one grid step (splitting only adds overhead)


def mlp_kernel(x_ref, w1_ref, b1_ref, w2_ref, b2_ref, w3_ref, b3_ref, o_ref):
    # fc1 + ReLU: bf16 MXU operands, f32 accumulation, f32 elementwise (VPU).
    h1 = jnp.dot(x_ref[...], w1_ref[...], preferred_element_type=jnp.float32)
    h1 = jnp.maximum(h1 + b1_ref[...], 0.0)

    # fc2 + ReLU
    h2 = jnp.dot(h1.astype(jnp.bfloat16), w2_ref[...],
                 preferred_element_type=jnp.float32)
    h2 = jnp.maximum(h2 + b2_ref[...], 0.0)

    # fc3 (class dim padded to 128 lanes) + softmax over classes (dim=1).
    logits = jnp.dot(h2.astype(jnp.bfloat16), w3_ref[...],
                     preferred_element_type=jnp.float32)
    logits = logits + b3_ref[...]
    m = jnp.max(logits, axis=-1, keepdims=True)
    e = jnp.exp(logits - m)                          # padded cols -> exp(-1e30) == 0
    denom = jnp.sum(e, axis=-1, keepdims=True)
    # exact reciprocal: rows sum to 1 at f32 precision; EUP/VPU have slack here.
    o_ref[...] = (e * pl.reciprocal(denom)).astype(o_ref.dtype)


def _choose_tiling(batch):
    """Pick (tm, b_pad). Tiny batches: one step sized to the batch (no wasted
    rows beyond the sublane pad). Large batches: an even number (>= 2) of steps
    of at most TM_MAX rows, so v7x's two TensorCores split the grid with no
    straggler step."""
    b8 = pl.cdiv(batch, 8) * 8                 # sublane multiple
    if b8 <= TM_SINGLE:
        return b8, b8
    nsteps = max(2, pl.cdiv(b8, TM_MAX))
    if nsteps % 2:
        nsteps += 1
    tm = pl.cdiv(pl.cdiv(b8, nsteps), 8) * 8
    return tm, nsteps * tm


def net01_forward(x, w1, b1, w2, b2, w3, b3):
    # glue: x.reshape(-1, 28*28); cast to bf16 BEFORE any padding, pad batch only.
    x2d = x.reshape(-1, K_IN)
    B = x2d.shape[0]
    tm, b_pad = _choose_tiling(B)

    x_p = x2d.astype(jnp.bfloat16)
    if b_pad != B:
        x_p = jnp.pad(x_p, ((0, b_pad - B), (0, 0)))

    # Weights -> bf16 MXU operands; biases stay f32 (VPU path).
    w1_p = w1.astype(jnp.bfloat16)                                    # (784, 512)
    w2_p = w2.astype(jnp.bfloat16)                                    # (512, 512)
    w3_p = jnp.zeros((H2, C_PAD), jnp.float32).at[:, :NCLASS].set(w3)
    w3_p = w3_p.astype(jnp.bfloat16)                                  # (512, 128)
    b1_p = b1.reshape(1, H1).astype(jnp.float32)
    b2_p = b2.reshape(1, H2).astype(jnp.float32)
    b3_p = jnp.full((1, C_PAD), NEG_BIAS, jnp.float32).at[:, :NCLASS].set(
        b3.reshape(1, NCLASS).astype(jnp.float32))

    out = pl.pallas_call(
        mlp_kernel,
        out_shape=jax.ShapeDtypeStruct((b_pad, C_PAD), jnp.float32),
        grid_spec=pltpu.PrefetchScalarGridSpec(
            num_scalar_prefetch=0,
            grid=(b_pad // tm,),
            in_specs=[
                pl.BlockSpec((tm, K_IN), lambda i: (i, 0)),    # x tile (pipelined, full K)
                pl.BlockSpec((K_IN, H1), lambda i: (0, 0)),    # w1 (VMEM-resident)
                pl.BlockSpec((1, H1), lambda i: (0, 0)),       # b1
                pl.BlockSpec((H1, H2), lambda i: (0, 0)),      # w2 (resident)
                pl.BlockSpec((1, H2), lambda i: (0, 0)),       # b2
                pl.BlockSpec((H2, C_PAD), lambda i: (0, 0)),   # w3 (resident)
                pl.BlockSpec((1, C_PAD), lambda i: (0, 0)),    # b3
            ],
            out_specs=pl.BlockSpec((tm, C_PAD), lambda i: (i, 0)),
        ),
        compiler_params=pltpu.CompilerParams(
            dimension_semantics=("parallel",),   # v7x: shard batch grid over 2 TCs
        ),
    )(x_p, w1_p, b1_p, w2_p, b2_p, w3_p, b3_p)

    # Drop batch padding and the 118 padded (zero-probability) classes.
    return out[:B, :NCLASS]


def init_params(key):
    """Deterministic init mimicking PyTorch's default Linear init
    (uniform(-1/sqrt(fan_in), 1/sqrt(fan_in))); stored (in, out) so the kernel
    computes x @ W, equivalent to PyTorch's x @ W.T with W of shape (out, in)."""
    def linear(key, fan_in, fan_out):
        kw, kb = jax.random.split(key)
        bound = 1.0 / jnp.sqrt(fan_in)
        w = jax.random.uniform(kw, (fan_in, fan_out), jnp.float32, -bound, bound)
        b = jax.random.uniform(kb, (1, fan_out), jnp.float32, -bound, bound)
        return w, b

    k1, k2, k3 = jax.random.split(key, 3)
    w1, b1 = linear(k1, K_IN, H1)
    w2, b2 = linear(k2, H1, H2)
    w3, b3 = linear(k3, H2, NCLASS)
    return w1, b1, w2, b2, w3, b3


if __name__ == "__main__":
    key = jax.random.PRNGKey(0)
    kx, kp = jax.random.split(key)

    # Small MNIST-like batch: (B, 1, 28, 28), NCHW.
    B = 8
    x = jax.random.normal(kx, (B, 1, 28, 28), jnp.float32)
    w1, b1, w2, b2, w3, b3 = init_params(kp)

    out = net01_forward(x, w1, b1, w2, b2, w3, b3)
    out = jax.block_until_ready(out)

    # Pure-JAX f32 reference (PyTorch semantics) for a sanity comparison.
    x2d = x.reshape(-1, K_IN)
    h = jax.nn.relu(x2d @ w1 + b1)
    h = jax.nn.relu(h @ w2 + b2)
    ref = jax.nn.softmax(h @ w3 + b3, axis=-1)

    assert out.shape == (B, NCLASS)
    # softmax rows sum to ~1 (exact f32 normalization in-kernel)
    assert bool(jnp.all(jnp.abs(jnp.sum(out, axis=1) - 1.0) < 1e-3))
    # bf16 MXU operands vs f32 reference
    assert float(jnp.max(jnp.abs(out - ref))) < 5e-2

    print("KERNEL_OK")
</pallas_src>

<mosaic_0001>
module attributes {stable_mosaic.version = 11 : i64} {
  func.func @mlp_kernel(%arg0: i32, %arg1: memref<8x784xbf16, #tpu.memory_space<vmem>>, %arg2: memref<784x512xbf16, #tpu.memory_space<vmem>>, %arg3: memref<1x512xf32, #tpu.memory_space<vmem>>, %arg4: memref<512x512xbf16, #tpu.memory_space<vmem>>, %arg5: memref<1x512xf32, #tpu.memory_space<vmem>>, %arg6: memref<512x128xbf16, #tpu.memory_space<vmem>>, %arg7: memref<1x128xf32, #tpu.memory_space<vmem>>, %arg8: memref<8x128xf32, #tpu.memory_space<vmem>>) attributes {dimension_semantics = [#tpu.dimension_semantics<parallel>], iteration_bounds = array<i64: 1>, scalar_prefetch = 0 : i64, scratch_operands = 0 : i64, tpu.core_type = #tpu.core_type<tc>, window_params = [{transform_indices = @transform_0, window_bounds = array<i64: 8, 784>}, {pipeline_mode = #tpu.pipeline_mode<synchronous>, transform_indices = @transform_1, window_bounds = array<i64: 784, 512>}, {pipeline_mode = #tpu.pipeline_mode<synchronous>, transform_indices = @transform_2, window_bounds = array<i64: 1, 512>}, {pipeline_mode = #tpu.pipeline_mode<synchronous>, transform_indices = @transform_3, window_bounds = array<i64: 512, 512>}, {pipeline_mode = #tpu.pipeline_mode<synchronous>, transform_indices = @transform_4, window_bounds = array<i64: 1, 512>}, {pipeline_mode = #tpu.pipeline_mode<synchronous>, transform_indices = @transform_5, window_bounds = array<i64: 512, 128>}, {pipeline_mode = #tpu.pipeline_mode<synchronous>, transform_indices = @transform_6, window_bounds = array<i64: 1, 128>}, {transform_indices = @transform_7, window_bounds = array<i64: 8, 128>}]} {
    %c0 = arith.constant 0 : index
    %c0_0 = arith.constant 0 : index
    %0 = vector.load %arg1[%c0, %c0_0] : memref<8x784xbf16, #tpu.memory_space<vmem>>, vector<8x784xbf16>
    %c0_1 = arith.constant 0 : index
    %c0_2 = arith.constant 0 : index
    %1 = vector.load %arg2[%c0_1, %c0_2] : memref<784x512xbf16, #tpu.memory_space<vmem>>, vector<784x512xbf16>
    %cst = arith.constant dense<0.000000e+00> : vector<8x512xf32>
    %2 = tpu.matmul %0, %1, %cst {dimension_numbers = #tpu.dot_dimension_numbers<[1], [0], [0], [1], [0, 0, 1, 1], [], []>} : vector<8x784xbf16>, vector<784x512xbf16>, vector<8x512xf32> -> vector<8x512xf32>
    %c0_3 = arith.constant 0 : index
    %c0_4 = arith.constant 0 : index
    %3 = vector.load %arg3[%c0_3, %c0_4] : memref<1x512xf32, #tpu.memory_space<vmem>>, vector<1x512xf32>
    %4 = vector.broadcast %3 : vector<1x512xf32> to vector<8x512xf32>
    %5 = arith.addf %2, %4 : vector<8x512xf32>
    %cst_5 = arith.constant 0.000000e+00 : f32
    %6 = vector.broadcast %cst_5 : f32 to vector<8x512xf32>
    %7 = arith.maximumf %5, %6 : vector<8x512xf32>
    %8 = arith.truncf %7 : vector<8x512xf32> to vector<8x512xbf16>
    %c0_6 = arith.constant 0 : index
    %c0_7 = arith.constant 0 : index
    %9 = vector.load %arg4[%c0_6, %c0_7] : memref<512x512xbf16, #tpu.memory_space<vmem>>, vector<512x512xbf16>
    %cst_8 = arith.constant dense<0.000000e+00> : vector<8x512xf32>
    %10 = tpu.matmul %8, %9, %cst_8 {dimension_numbers = #tpu.dot_dimension_numbers<[1], [0], [0], [1], [0, 0, 1, 1], [], []>} : vector<8x512xbf16>, vector<512x512xbf16>, vector<8x512xf32> -> vector<8x512xf32>
    %c0_9 = arith.constant 0 : index
    %c0_10 = arith.constant 0 : index
    %11 = vector.load %arg5[%c0_9, %c0_10] : memref<1x512xf32, #tpu.memory_space<vmem>>, vector<1x512xf32>
    %12 = vector.broadcast %11 : vector<1x512xf32> to vector<8x512xf32>
    %13 = arith.addf %10, %12 : vector<8x512xf32>
    %cst_11 = arith.constant 0.000000e+00 : f32
    %14 = vector.broadcast %cst_11 : f32 to vector<8x512xf32>
    %15 = arith.maximumf %13, %14 : vector<8x512xf32>
    %16 = arith.truncf %15 : vector<8x512xf32> to vector<8x512xbf16>
    %c0_12 = arith.constant 0 : index
    %c0_13 = arith.constant 0 : index
    %17 = vector.load %arg6[%c0_12, %c0_13] : memref<512x128xbf16, #tpu.memory_space<vmem>>, vector<512x128xbf16>
    %cst_14 = arith.constant dense<0.000000e+00> : vector<8x128xf32>
    %18 = tpu.matmul %16, %17, %cst_14 {dimension_numbers = #tpu.dot_dimension_numbers<[1], [0], [0], [1], [0, 0, 1, 1], [], []>} : vector<8x512xbf16>, vector<512x128xbf16>, vector<8x128xf32> -> vector<8x128xf32>
    %c0_15 = arith.constant 0 : index
    %c0_16 = arith.constant 0 : index
    %19 = vector.load %arg7[%c0_15, %c0_16] : memref<1x128xf32, #tpu.memory_space<vmem>>, vector<1x128xf32>
    %20 = vector.broadcast %19 : vector<1x128xf32> to vector<8x128xf32>
    %21 = arith.addf %18, %20 : vector<8x128xf32>
    %cst_17 = arith.constant dense<0xFF800000> : vector<8xf32>
    %22 = vector.multi_reduction <maximumf>, %21, %cst_17 [1] : vector<8x128xf32> to vector<8xf32>
    %23 = vector.shape_cast %22 : vector<8xf32> to vector<8x1xf32>
    %24 = vector.broadcast %23 : vector<8x1xf32> to vector<8x128xf32>
    %25 = arith.subf %21, %24 : vector<8x128xf32>
    %26 = math.exp %25 : vector<8x128xf32>
    %cst_18 = arith.constant dense<0.000000e+00> : vector<8xf32>
    %27 = vector.multi_reduction <add>, %26, %cst_18 [1] : vector<8x128xf32> to vector<8xf32>
    %28 = vector.shape_cast %27 : vector<8xf32> to vector<8x1xf32>
    %29 = tpu.reciprocal %28 : vector<8x1xf32> -> vector<8x1xf32>
    %30 = vector.broadcast %29 : vector<8x1xf32> to vector<8x128xf32>
    %31 = arith.mulf %26, %30 : vector<8x128xf32>
    %c0_19 = arith.constant 0 : index
    %c0_20 = arith.constant 0 : index
    %32 = vector.load %arg8[%c0_19, %c0_20] : memref<8x128xf32, #tpu.memory_space<vmem>>, vector<8x128xf32>
    tpu.vector_store %arg8[%c0_19, %c0_20], %31 {strides = array<i32>} : memref<8x128xf32, #tpu.memory_space<vmem>>, vector<8x128xf32>,
    return
  }
  func.func @transform_0(%arg0: i32) -> (i32, i32) {
    %c0_i32 = arith.constant 0 : i32
    %c0_i32_0 = arith.constant 0 : i32
    return %arg0, %c0_i32 : i32, i32
  }
  func.func @transform_1(%arg0: i32) -> (i32, i32) {
    %c0_i32 = arith.constant 0 : i32
    %c0_i32_0 = arith.constant 0 : i32
    %c0_i32_1 = arith.constant 0 : i32
    return %c0_i32, %c0_i32_0 : i32, i32
  }
  func.func @transform_2(%arg0: i32) -> (i32, i32) {
    %c0_i32 = arith.constant 0 : i32
    %c0_i32_0 = arith.constant 0 : i32
    %c0_i32_1 = arith.constant 0 : i32
    return %c0_i32, %c0_i32_0 : i32, i32
  }
  func.func @transform_3(%arg0: i32) -> (i32, i32) {
    %c0_i32 = arith.constant 0 : i32
    %c0_i32_0 = arith.constant 0 : i32
    %c0_i32_1 = arith.constant 0 : i32
    return %c0_i32, %c0_i32_0 : i32, i32
  }
  func.func @transform_4(%arg0: i32) -> (i32, i32) {
    %c0_i32 = arith.constant 0 : i32
    %c0_i32_0 = arith.constant 0 : i32
    %c0_i32_1 = arith.constant 0 : i32
    return %c0_i32, %c0_i32_0 : i32, i32
  }
  func.func @transform_5(%arg0: i32) -> (i32, i32) {
    %c0_i32 = arith.constant 0 : i32
    %c0_i32_0 = arith.constant 0 : i32
    %c0_i32_1 = arith.constant 0 : i32
    return %c0_i32, %c0_i32_0 : i32, i32
  }
  func.func @transform_6(%arg0: i32) -> (i32, i32) {
    %c0_i32 = arith.constant 0 : i32
    %c0_i32_0 = arith.constant 0 : i32
    %c0_i32_1 = arith.constant 0 : i32
    return %c0_i32, %c0_i32_0 : i32, i32
  }
  func.func @transform_7(%arg0: i32) -> (i32, i32) {
    %c0_i32 = arith.constant 0 : i32
    %c0_i32_0 = arith.constant 0 : i32
    return %arg0, %c0_i32 : i32, i32
  }
}

</mosaic_0001>

<bundles_post_ra>
// kernel: tpu_custom_call.1
= control target key start
LH: loop header
LB: loop body
LE: loop exit
PB: predicated region body
PF: predicated region fallthrough
CT: control target
= control target key end

     0   :  { %12 = vsyncpa [#allocation3], 0  ;;  %s5241_s0 = inlined_call_operand.hbm [shape: bf16[8,784], index: 0, kind: input, shape index: {}]   ;;  %s5242_s1 = inlined_call_operand.hbm [shape: bf16[784,512], index: 1, kind: input, shape index: {}]   ;;  %s5243_s2 = inlined_call_operand.hbm [shape: f32[1,512], index: 2, kind: input, shape index: {}]   ;;  %s5244_s3 = inlined_call_operand.hbm [shape: bf16[512,512], index: 3, kind: input, shape index: {}]   ;;  %s5245_s4 = inlined_call_operand.hbm [shape: f32[1,512], index: 4, kind: input, shape index: {}]   ;;  %s5246_s5 = inlined_call_operand.hbm [shape: bf16[512,128], index: 5, kind: input, shape index: {}]   ;;  %s5247_s6 = inlined_call_operand.vmem [shape: f32[1,128], index: 6, kind: input, shape index: {}]   ;;  %s5248_s7 = inlined_call_operand.hbm [shape: f32[8,128], index: 7, kind: output, shape index: {}]  }
   0x1   :  { %13 = vsyncpa [#allocation6], 0 }
   0x2   :  { %14 = vsyncpa [#allocation9], 0 }
   0x3   :  { %15 = vsyncpa [#allocation12], 0  ;;  %s32_s26 = sshll.u32 %s5242_s1, 4  ;;  %s33_s26 = int_to_ptr.hbm [resolvable:$true] %s32_s26 }
   0x4   :  { %16 = vsyncpa [#allocation4], 0  ;;  %s5033_s27 = smov [#allocation5]   ;;  %s56_s8 = sshll.u32 %s5244_s3, 4  ;;  %s57_s8 = int_to_ptr.hbm [resolvable:$true] %s56_s8 }
   0x5   :  { %s34_s28 = sshll.u32 %s5033_s27, 4  ;;  %s5034_s9 = smov 256   ;;  %s35_s28 = int_to_ptr.vmem [resolvable:$true] %s34_s28 }
   0x6   :  { %s5035_s10 = smov 16   ;;  %s5036_s11 = smov [#allocation8]  }
   0x7   :  { %40 = dma.hbm_to_vmem [thread:$0]  %s33_s26, 25088, %s35_s28, [#allocation6], %s5034_s9, %s5034_s9, %s5035_s10  }
   0x8   :  { %s58_s12 = sshll.u32 %s5036_s11, 4  ;;  %s22_s15 = sshll.u32 %s5241_s0, 4  ;;  %s59_s12 = int_to_ptr.vmem [resolvable:$true] %s58_s12  ;;  %s23_s15 = int_to_ptr.hbm [resolvable:$true] %s22_s15 }
   0x9   :  { %64 = dma.hbm_to_vmem [thread:$0]  %s57_s8, 16384, %s59_s12, [#allocation9], %s5034_s9, %s5034_s9, %s5035_s10  }
   0xa   :  { %s46_s17 = sshll.u32 %s5243_s2, 4  ;;  %s5037_s18 = smov [#allocation2]   ;;  %s47_s17 = int_to_ptr.hbm [resolvable:$true] %s46_s17 }
   0xb   :  { %s24_s19 = sshll.u32 %s5037_s18, 4  ;;  %s5038_s3 = smov [#allocation7]   ;;  %s25_s19 = int_to_ptr.vmem [resolvable:$true] %s24_s19 }
   0xc   :  { %27 = dma.hbm_to_vmem [thread:$0]  %s23_s15, 448, %s25_s19, [#allocation3]  }
   0xd   :  { %s48_s20 = sshll.u32 %s5038_s3, 4  ;;  %s70_s23 = sshll.u32 %s5245_s4, 4  ;;  %s49_s20 = int_to_ptr.vmem [resolvable:$true] %s48_s20  ;;  %s71_s23 = int_to_ptr.hbm [resolvable:$true] %s70_s23 }
   0xe   :  { %51 = dma.hbm_to_vmem [thread:$0]  %s47_s17, 64, %s49_s20, [#allocation6]  }
   0xf   :  { %s80_s25 = sshll.u32 %s5246_s5, 4  ;;  %s5039_s26 = smov [#allocation10]   ;;  %s81_s25 = int_to_ptr.hbm [resolvable:$true] %s80_s25 }
  0x10   :  { %s72_s2 = sshll.u32 %s5039_s26, 4  ;;  %s5040_s27 = smov [#allocation11]   ;;  %s73_s2 = int_to_ptr.vmem [resolvable:$true] %s72_s2 }
  0x11   :  { %75 = dma.hbm_to_vmem [thread:$0]  %s71_s23, 64, %s73_s2, [#allocation9]  }
  0x12   :  { %s82_s28 = sshll.u32 %s5040_s27, 4  ;;  %s5041_s29 = smov 64   ;;  %s83_s28 = int_to_ptr.vmem [resolvable:$true] %s82_s28 }
  0x13   :  { %s5042_s30 = smov 4  }
  0x14   :  { %88 = dma.hbm_to_vmem [thread:$0]  %s81_s25, 4096, %s83_s28, [#allocation12], %s5041_s29, %s5041_s29, %s5042_s30  }
  0x15   :  { %5023 = dma.done.wait [#allocation3], 448  }
  0x16   :  { %5024 = vsyncadd [#allocation3], 4294966848 }
  0x17   :  { %5025 = dma.done.wait [#allocation6], 25152  }
  0x18   :  { %5026 = vsyncadd [#allocation6], 4294942144 }
  0x19   :  { %5027 = dma.done.wait [#allocation9], 16448  }
  0x1a   :  { %5028 = vsyncadd [#allocation9], 4294950848 }
  0x1b   :  { %5029 = dma.done.wait [#allocation12], 4096  }
  0x1c   :  { %5030 = vsyncadd [#allocation12], 4294963200  ;;  %v3169_v0 = vld [vmem:[#allocation5 + $0xe0] sm:$0xf]  ;;  %v4513_v1 = vld [vmem:[#allocation5 + $0xec] sm:$0xf0] }
  0x1d   :  { %v3297_v2 = vld [vmem:[#allocation5 + $0x1e0] sm:$0xf]  ;;  %v3170_v3 = vor.u32 %v4513_v1, %v3169_v0  ;;  %v4545_v4 = vld [vmem:[#allocation5 + $0x1ec] sm:$0xf0]  ;;  %vm1330_vm0 = vcmask 130048   ;;  %s3042_s11 = sshll.u32 %s5248_s7, 4  ;;  %s3043_s11 = int_to_ptr.hbm [resolvable:$true] %s3042_s11 }
  0x1e   :  { %v3425_v5 = vld [vmem:[#allocation5 + $0x2e0] sm:$0xf]  ;;  %v4577_v6 = vld [vmem:[#allocation5 + $0x2ec] sm:$0xf0]  ;;  %v3298_v7 = vor.u32 %v4545_v4, %v3297_v2 }
  0x1f   :  { %v3426_v8 = vor.u32 %v4577_v6, %v3425_v5  ;;  %v3553_v9 = vld [vmem:[#allocation5 + $0x3e0] sm:$0xf]  ;;  %v4609_v10 = vld [vmem:[#allocation5 + $0x3ec] sm:$0xf0]  ;;  %1334 = vmatpush.bf16.msra.mxu0 %v3170_v3 }
  0x20   :  { %v3153_v11 = vld [vmem:[#allocation5 + $0xc0] sm:$0xf]  ;;  %v3554_v12 = vor.u32 %v4609_v10, %v3553_v9  ;;  %v4509_v13 = vld [vmem:[#allocation5 + $0xcc] sm:$0xf0]  ;;  %1347 = vmatpush.bf16.msra.mxu1 %v3298_v7 }
  0x21   :  { %v3281_v14 = vld [vmem:[#allocation5 + $0x1c0] sm:$0xf]  ;;  %v4541_v15 = vld [vmem:[#allocation5 + $0x1cc] sm:$0xf0]  ;;  %1360 = vmatpush.bf16.msra.mxu2 %v3426_v8  ;;  %v3154_v16 = vor.u32 %v4509_v13, %v3153_v11 }
  0x22   :  { %v3282_v17 = vor.u32 %v4541_v15, %v3281_v14  ;;  %v3409_v18 = vld [vmem:[#allocation5 + $0x2c0] sm:$0xf]  ;;  %v4573_v19 = vld [vmem:[#allocation5 + $0x2cc] sm:$0xf0]  ;;  %1373 = vmatpush.bf16.msra.mxu3 %v3554_v12 }
  0x23   :  { %v3537_v20 = vld [vmem:[#allocation5 + $0x3c0] sm:$0xf]  ;;  %v3410_v21 = vor.u32 %v4573_v19, %v3409_v18  ;;  %v4605_v22 = vld [vmem:[#allocation5 + $0x3cc] sm:$0xf0]  ;;  %1335 = vmatpush.bf16.msra.mxu0 %v3154_v16 }
  0x24   :  { %v3137_v23 = vld [vmem:[#allocation5 + $0xa0] sm:$0xf]  ;;  %v4505_v24 = vld [vmem:[#allocation5 + $0xac] sm:$0xf0]  ;;  %v3538_v25 = vor.u32 %v4605_v22, %v3537_v20  ;;  %1348 = vmatpush.bf16.msra.mxu1 %v3282_v17 }
  0x25   :  { %v3265_v26 = vld [vmem:[#allocation5 + $0x1a0] sm:$0xf]  ;;  %v4537_v27 = vld [vmem:[#allocation5 + $0x1ac] sm:$0xf0]  ;;  %v3138_v29 = vor.u32 %v4505_v24, %v3137_v23  ;;  %1361 = vmatpush.bf16.msra.mxu2 %v3410_v21 }
  0x26   :  { %v3393_v28 = vld [vmem:[#allocation5 + $0x2a0] sm:$0xf]  ;;  %v4569_v30 = vld [vmem:[#allocation5 + $0x2ac] sm:$0xf0]  ;;  %v3266_v33 = vor.u32 %v4537_v27, %v3265_v26  ;;  %1374 = vmatpush.bf16.msra.mxu3 %v3538_v25 }
  0x27   :  { %v3521_v31 = vld [vmem:[#allocation5 + $0x3a0] sm:$0xf]  ;;  %v4601_v32 = vld [vmem:[#allocation5 + $0x3ac] sm:$0xf0]  ;;  %v3394_v34 = vor.u32 %v4569_v30, %v3393_v28  ;;  %1336 = vmatpush.bf16.msra.mxu0 %v3138_v29 }
  0x28   :  { %v3121_v35 = vld [vmem:[#allocation5 + $0x80] sm:$0xf]  ;;  %v4501_v36 = vld [vmem:[#allocation5 + $0x8c] sm:$0xf0]  ;;  %v3522_v38 = vor.u32 %v4601_v32, %v3521_v31  ;;  %1349 = vmatpush.bf16.msra.mxu1 %v3266_v33 }
  0x29   :  { %v3249_v37 = vld [vmem:[#allocation5 + $0x180] sm:$0xf]  ;;  %v4533_v39 = vld [vmem:[#allocation5 + $0x18c] sm:$0xf0]  ;;  %v3122_v44 = vor.u32 %v4501_v36, %v3121_v35  ;;  %1362 = vmatpush.bf16.msra.mxu2 %v3394_v34  ;;  %v4511_v34 = vld [vmem:[#allocation5 + $0xe4] sm:$0xf] }
  0x2a   :  { %v3377_v40 = vld [vmem:[#allocation5 + $0x280] sm:$0xf]  ;;  %v4565_v41 = vld [vmem:[#allocation5 + $0x28c] sm:$0xf0]  ;;  %v3250_v45 = vor.u32 %v4533_v39, %v3249_v37  ;;  %1375 = vmatpush.bf16.msra.mxu3 %v3522_v38  ;;  %v3171_v35 = vld [vmem:[#allocation5 + $0xf0] sm:$0xf0] }
  0x2b   :  { %v3505_v42 = vld [vmem:[#allocation5 + $0x380] sm:$0xf]  ;;  %v4597_v43 = vld [vmem:[#allocation5 + $0x38c] sm:$0xf0]  ;;  %v3378_v46 = vor.u32 %v4565_v41, %v3377_v40  ;;  %1337 = vmatpush.bf16.msra.mxu0 %v3122_v44  ;;  %v116_v37 = vld [vmem:[#allocation2] sm:$0xff] }
  0x2c   :  { %v3105_v47 = vld [vmem:[#allocation5 + $0x60] sm:$0xf]  ;;  %v4497_v48 = vld [vmem:[#allocation5 + $0x6c] sm:$0xf0]  ;;  %v3506_v50 = vor.u32 %v4597_v43, %v3505_v42  ;;  %1350 = vmatpush.bf16.msra.mxu1 %v3250_v45  ;;  %v330_v41 = vunpack.c.l.b16 %v116_v37 }
  0x2d   :  { %v3233_v49 = vld [vmem:[#allocation5 + $0x160] sm:$0xf]  ;;  %v4529_v51 = vld [vmem:[#allocation5 + $0x16c] sm:$0xf0]  ;;  %v3106_v56 = vor.u32 %v4497_v48, %v3105_v47  ;;  %1363 = vmatpush.bf16.msra.mxu2 %v3378_v46  ;;  %v4543_v46 = vld [vmem:[#allocation5 + $0x1e4] sm:$0xf] }
  0x2e   :  { %v3361_v52 = vld [vmem:[#allocation5 + $0x260] sm:$0xf]  ;;  %v4561_v53 = vld [vmem:[#allocation5 + $0x26c] sm:$0xf0]  ;;  %v3234_v57 = vor.u32 %v4529_v51, %v3233_v49  ;;  %1376 = vmatpush.bf16.msra.mxu3 %v3506_v50  ;;  %v3299_v47 = vld [vmem:[#allocation5 + $0x1f0] sm:$0xf0]  ;;  %v3174_v49 = vor.u32 %v4511_v34, %v3171_v35 }
  0x2f   :  { %v3489_v54 = vld [vmem:[#allocation5 + $0x360] sm:$0xf]  ;;  %v4593_v55 = vld [vmem:[#allocation5 + $0x36c] sm:$0xf0]  ;;  %v3362_v58 = vor.u32 %v4561_v53, %v3361_v52  ;;  %1338 = vmatpush.bf16.msra.mxu0 %v3106_v56  ;;  %v3155_v56 = vld [vmem:[#allocation5 + $0xd0] sm:$0xf0] }
  0x30   :  { %v3089_v59 = vld [vmem:[#allocation5 + $0x40] sm:$0xf]  ;;  %v4493_v60 = vld [vmem:[#allocation5 + $0x4c] sm:$0xf0]  ;;  %v3490_v62 = vor.u32 %v4593_v55, %v3489_v54  ;;  %1351 = vmatpush.bf16.msra.mxu1 %v3234_v57  ;;  %v4507_v55 = vld [vmem:[#allocation5 + $0xc4] sm:$0xf]  ;;  %v5104_v57 = vpack.c.b16 %v330_v41, %v330_v41 }
  0x31   :  { %v3217_v61 = vld [vmem:[#allocation5 + $0x140] sm:$0xf]  ;;  %v4525_v63 = vld [vmem:[#allocation5 + $0x14c] sm:$0xf0]  ;;  %v3090_v4 = vor.u32 %v4493_v60, %v3089_v59  ;;  %1364 = vmatpush.bf16.msra.mxu2 %v3362_v58  ;;  %v331_v58 = vunpack.c.h.b16 %v116_v37  ;;  %v3107_v34 = vld [vmem:[#allocation5 + $0x70] sm:$0xf0] }
  0x32   :  { %v3345_v0 = vld [vmem:[#allocation5 + $0x240] sm:$0xf]  ;;  %v4557_v1 = vld [vmem:[#allocation5 + $0x24c] sm:$0xf0]  ;;  %v3218_v5 = vor.u32 %v4525_v63, %v3217_v61  ;;  %1377 = vmatpush.bf16.msra.mxu3 %v3490_v62  ;;  %v3302_v61 = vor.u32 %v4543_v46, %v3299_v47  ;;  %v4539_v63 = vld [vmem:[#allocation5 + $0x1c4] sm:$0xf] }
  0x33   :  { %v3473_v2 = vld [vmem:[#allocation5 + $0x340] sm:$0xf]  ;;  %v4589_v3 = vld [vmem:[#allocation5 + $0x34c] sm:$0xf0]  ;;  %v3346_v6 = vor.u32 %v4557_v1, %v3345_v0  ;;  %1339 = vmatpush.bf16.msra.mxu0 %v3090_v4  ;;  %v3283_v0 = vld [vmem:[#allocation5 + $0x1d0] sm:$0xf0] }
  0x34   :  { %v3073_v7 = vld [vmem:[#allocation5 + $0x20] sm:$0xf]  ;;  %v4489_v8 = vld [vmem:[#allocation5 + $0x2c] sm:$0xf0]  ;;  %v3474_v10 = vor.u32 %v4589_v3, %v3473_v2  ;;  %1352 = vmatpush.bf16.msra.mxu1 %v3218_v5  ;;  %v3158_v2 = vor.u32 %v4507_v55, %v3155_v56  ;;  %v4491_v46 = vld [vmem:[#allocation5 + $0x44] sm:$0xf] }
  0x35   :  { %v3201_v9 = vld [vmem:[#allocation5 + $0x120] sm:$0xf]  ;;  %v4521_v11 = vld [vmem:[#allocation5 + $0x12c] sm:$0xf0]  ;;  %v3074_v17 = vor.u32 %v4489_v8, %v3073_v7  ;;  %1365 = vmatpush.bf16.msra.mxu2 %v3346_v6  ;;  %v4503_v7 = vld [vmem:[#allocation5 + $0xa4] sm:$0xf] }
  0x36   :  { %v3329_v12 = vld [vmem:[#allocation5 + $0x220] sm:$0xf]  ;;  %v4553_v13 = vld [vmem:[#allocation5 + $0x22c] sm:$0xf0]  ;;  %v3202_v21 = vor.u32 %v4521_v11, %v3201_v9  ;;  %1378 = vmatpush.bf16.msra.mxu3 %v3474_v10  ;;  %v3139_v8 = vld [vmem:[#allocation5 + $0xb0] sm:$0xf0]  ;;  %v5110_v9 = vpack.c.b16 %v331_v58, %v331_v58  ;;  %v3286_v10 = vor.u32 %v4539_v63, %v3283_v0 }
  0x37   :  { %v3457_v14 = vld [vmem:[#allocation5 + $0x320] sm:$0xf]  ;;  %v4585_v15 = vld [vmem:[#allocation5 + $0x32c] sm:$0xf0]  ;;  %v3330_v22 = vor.u32 %v4553_v13, %v3329_v12  ;;  %1340 = vmatpush.bf16.msra.mxu0 %v3074_v17  ;;  %v4535_v12 = vld [vmem:[#allocation5 + $0x1a4] sm:$0xf] }
  0x38   :  { %v3057_v16 = vld [vmem:[#allocation5] sm:$0xf]  ;;  %v4485_v18 = vld [vmem:[#allocation5 + $0xc] sm:$0xf0]  ;;  %v3458_v26 = vor.u32 %v4585_v15, %v3457_v14  ;;  %1353 = vmatpush.bf16.msra.mxu1 %v3202_v21  ;;  %v3267_v13 = vld [vmem:[#allocation5 + $0x1b0] sm:$0xf0]  ;;  %v3142_v15 = vor.u32 %v4503_v7, %v3139_v8 }
  0x39   :  { %v3185_v19 = vld [vmem:[#allocation5 + $0x100] sm:$0xf]  ;;  %v4517_v20 = vld [vmem:[#allocation5 + $0x10c] sm:$0xf0]  ;;  %v3058_v33 = vor.u32 %v4485_v18, %v3057_v16  ;;  %1366 = vmatpush.bf16.msra.mxu2 %v3330_v22  ;;  %v3123_v21 = vld [vmem:[#allocation5 + $0x90] sm:$0xf0] }
  0x3a   :  { %v3313_v23 = vld [vmem:[#allocation5 + $0x200] sm:$0xf]  ;;  %v4549_v24 = vld [vmem:[#allocation5 + $0x20c] sm:$0xf0]  ;;  %v3186_v38 = vor.u32 %v4517_v20, %v3185_v19  ;;  %1379 = vmatpush.bf16.msra.mxu3 %v3458_v26  ;;  %v4499_v20 = vld [vmem:[#allocation5 + $0x84] sm:$0xf] }
  0x3b   :  { %v117_v25 = vld [vmem:[#allocation2 + $0x8] sm:$0xff]  ;;  %v3441_v27 = vld [vmem:[#allocation5 + $0x300] sm:$0xf]  ;;  %v3314_v39 = vor.u32 %v4549_v24, %v3313_v23  ;;  %1341 = vmatpush.bf16.msra.mxu0 %v3058_v33  ;;  %v119_v22 = vld [vmem:[#allocation2 + $0x18] sm:$0xf]  ;;  %v3270_v23 = vor.u32 %v4535_v12, %v3267_v13 }
  0x3c   :  { %v4581_v28 = vld [vmem:[#allocation5 + $0x30c] sm:$0xf0]  ;;  %v3681_v29 = vld [vmem:[#allocation5 + $0x4e0] sm:$0xf]  ;;  %v332_v36 = vunpack.c.l.b16 %v117_v25  ;;  %v333_v42 = vunpack.c.h.b16 %v117_v25  ;;  %1354 = vmatpush.bf16.msra.mxu1 %v3186_v38  ;;  %v4531_v25 = vld [vmem:[#allocation5 + $0x184] sm:$0xf]  ;;  %v336_v35 = vunpack.c.l.b16 %v119_v22 }
  0x3d   :  { %v4641_v30 = vld [vmem:[#allocation5 + $0x4ec] sm:$0xf0]  ;;  %v3809_v31 = vld [vmem:[#allocation5 + $0x5e0] sm:$0xf]  ;;  %v3442_v43 = vor.u32 %v4581_v28, %v3441_v27  ;;  %1367 = vmatpush.bf16.msra.mxu2 %v3314_v39  ;;  %v3251_v26 = vld [vmem:[#allocation5 + $0x190] sm:$0xf0]  ;;  %v3126_v28 = vor.u32 %v4499_v20, %v3123_v21 }
  0x3e   :  { %v4673_v32 = vld [vmem:[#allocation5 + $0x5ec] sm:$0xf0]  ;;  %v3825_v40 = vld [vmem:[#allocation5 + $0x600] sm:$0xf]  ;;  %v3682_v44 = vor.u32 %v4641_v30, %v3681_v29  ;;  %v5102_v53 = vpack.c.b16 %v332_v36, %v332_v36  ;;  %v5106_v60 = vpack.c.b16 %v333_v42, %v333_v42  ;;  %1342 = vmatmul.bf16.vlgmr.msra.gmra.mxu0 %v5104_v57  ;;  %v4495_v33 = vld [vmem:[#allocation5 + $0x64] sm:$0xf]  ;;  %v3254_v36 = vor.u32 %v4531_v25, %v3251_v26 }
  0x3f   :  { %v4677_v45 = vld [vmem:[#allocation5 + $0x60c] sm:$0xf0]  ;;  %v3810_v48 = vor.u32 %v4673_v32, %v3809_v31  ;;  %v3665_v50 = vld [vmem:[#allocation5 + $0x4c0] sm:$0xf]  ;;  %1380 = vmatpush.bf16.msra.mxu3 %v3442_v43  ;;  %1355 = vmatmul.bf16.vlgmr.msra.gmra.mxu1 %v5110_v9  ;;  %v4527_v38 = vld [vmem:[#allocation5 + $0x164] sm:$0xf]  ;;  %v3110_v41 = vor.u32 %v4495_v33, %v3107_v34 }
  0x40   :  { %v4637_v51 = vld [vmem:[#allocation5 + $0x4cc] sm:$0xf0]  ;;  %v3793_v52 = vld [vmem:[#allocation5 + $0x5c0] sm:$0xf]  ;;  %v3826_v59 = vor.u32 %v4677_v45, %v3825_v40  ;;  %1386 = vmatpush.bf16.msrb.mxu0 %v3682_v44  ;;  %1368 = vmatmul.bf16.vlgmr.msra.gmra.mxu2 %v5102_v53  ;;  %v3235_v39 = vld [vmem:[#allocation5 + $0x170] sm:$0xf0] }
  0x41   :  { %v4669_v54 = vld [vmem:[#allocation5 + $0x5cc] sm:$0xf0]  ;;  %v3666_v62 = vor.u32 %v4637_v51, %v3665_v50  ;;  %1399 = vmatpush.bf16.msrb.mxu1 %v3810_v48  ;;  %v3649_v3 = vld [vmem:[#allocation5 + $0x4a0] sm:$0xf]  ;;  %v3091_v47 = vld [vmem:[#allocation5 + $0x50] sm:$0xf0]  ;;  %v5114_v48 = vpack.c.b16 %v336_v35, %v336_v35 }
  0x42   :  { %v3794_v1 = vor.u32 %v4669_v54, %v3793_v52  ;;  %v4633_v4 = vld [vmem:[#allocation5 + $0x4ac] sm:$0xf0]  ;;  %v3777_v5 = vld [vmem:[#allocation5 + $0x5a0] sm:$0xf]  ;;  %1419 = vmatpush.bf16.msrb.mxu2 %v3826_v59  ;;  %1381 = vmatmul.bf16.vlgmr.msra.gmra.mxu3 %v5106_v60  ;;  %v4523_v51 = vld [vmem:[#allocation5 + $0x144] sm:$0xf]  ;;  %v3094_v55 = vor.u32 %v4491_v46, %v3091_v47 }
  0x43   :  { %1425 = vmatpush.bf16.msrb.mxu3 %v3174_v49  ;;  %v4665_v6 = vld [vmem:[#allocation5 + $0x5ac] sm:$0xf0]  ;;  %v3650_v11 = vor.u32 %v4633_v4, %v3649_v3  ;;  %v3633_v16 = vld [vmem:[#allocation5 + $0x480] sm:$0xf]  ;;  %v3238_v49 = vor.u32 %v4527_v38, %v3235_v39  ;;  %v3219_v52 = vld [vmem:[#allocation5 + $0x150] sm:$0xf0] }
  0x44   :  { %1387 = vmatpush.bf16.msrb.mxu0 %v3666_v62  ;;  %v3778_v14 = vor.u32 %v4665_v6, %v3777_v5  ;;  %v4629_v17 = vld [vmem:[#allocation5 + $0x48c] sm:$0xf0]  ;;  %v3761_v18 = vld [vmem:[#allocation5 + $0x580] sm:$0xf]  ;;  %v4487_v62 = vld [vmem:[#allocation5 + $0x24] sm:$0xf] }
  0x45   :  { %1400 = vmatpush.bf16.msrb.mxu1 %v3794_v1  ;;  %v4661_v19 = vld [vmem:[#allocation5 + $0x58c] sm:$0xf0]  ;;  %v3634_v24 = vor.u32 %v4629_v17, %v3633_v16  ;;  %v3617_v29 = vld [vmem:[#allocation5 + $0x460] sm:$0xf]  ;;  %v3075_v63 = vld [vmem:[#allocation5 + $0x30] sm:$0xf0]  ;;  %v3222_v1 = vor.u32 %v4523_v51, %v3219_v52 }
  0x46   :  { %1438 = vmatpush.bf16.msra.mxu2 %v3302_v61  ;;  %v3762_v27 = vor.u32 %v4661_v19, %v3761_v18  ;;  %v4625_v30 = vld [vmem:[#allocation5 + $0x46c] sm:$0xf0]  ;;  %v3745_v31 = vld [vmem:[#allocation5 + $0x560] sm:$0xf]  ;;  %v4519_v0 = vld [vmem:[#allocation5 + $0x124] sm:$0xf]  ;;  %v3078_v7 = vor.u32 %v4487_v62, %v3075_v63 }
  0x47   :  { %1426 = vmatpush.bf16.msrb.mxu3 %v3158_v2  ;;  %v4657_v32 = vld [vmem:[#allocation5 + $0x56c] sm:$0xf0]  ;;  %v3618_v37 = vor.u32 %v4625_v30, %v3617_v29  ;;  %v3601_v42 = vld [vmem:[#allocation5 + $0x440] sm:$0xf]  ;;  %v3203_v3 = vld [vmem:[#allocation5 + $0x130] sm:$0xf0] }
  0x48   :  { %1388 = vmatpush.bf16.msrb.mxu0 %v3650_v11  ;;  %v3746_v40 = vor.u32 %v4657_v32, %v3745_v31  ;;  %v4621_v43 = vld [vmem:[#allocation5 + $0x44c] sm:$0xf0]  ;;  %v3729_v44 = vld [vmem:[#allocation5 + $0x540] sm:$0xf]  ;;  %v118_v5 = vld [vmem:[#allocation2 + $0x10] sm:$0xff]  ;;  %v3206_v19 = vor.u32 %v4519_v0, %v3203_v3 }
  0x49   :  { %1401 = vmatpush.bf16.msrb.mxu1 %v3778_v14  ;;  %v4653_v45 = vld [vmem:[#allocation5 + $0x54c] sm:$0xf0]  ;;  %v3602_v50 = vor.u32 %v4621_v43, %v3601_v42  ;;  %v3585_v56 = vld [vmem:[#allocation5 + $0x420] sm:$0xf]  ;;  %v4483_v12 = vld [vmem:[#allocation5 + $0x4] sm:$0xf]  ;;  %v334_v18 = vunpack.c.l.b16 %v118_v5 }
  0x4a   :  { %1439 = vmatpush.bf16.msra.mxu2 %v3286_v10  ;;  %v3730_v54 = vor.u32 %v4653_v45, %v3729_v44  ;;  %v4617_v58 = vld [vmem:[#allocation5 + $0x42c] sm:$0xf0]  ;;  %v3713_v59 = vld [vmem:[#allocation5 + $0x520] sm:$0xf]  ;;  %v3059_v13 = vld [vmem:[#allocation5 + $0x10] sm:$0xf0] }
  0x4b   :  { %1427 = vmatpush.bf16.msrb.mxu3 %v3142_v15  ;;  %v4649_v61 = vld [vmem:[#allocation5 + $0x52c] sm:$0xf0]  ;;  %v3586_v2 = vor.u32 %v4617_v58, %v3585_v56  ;;  %v3569_v4 = vld [vmem:[#allocation5 + $0x400] sm:$0xf]  ;;  %v4575_v14 = vld [vmem:[#allocation5 + $0x2e4] sm:$0xf]  ;;  %v3062_v25 = vor.u32 %v4483_v12, %v3059_v13  ;;  %v5118_v34 = vpack.c.b16 %v334_v18, %v334_v18 }
  0x4c   :  { %1389 = vmatpush.bf16.msrb.mxu0 %v3634_v24  ;;  %v3714_v6 = vor.u32 %v4649_v61, %v3713_v59  ;;  %v4613_v8 = vld [vmem:[#allocation5 + $0x40c] sm:$0xf0]  ;;  %v3697_v10 = vld [vmem:[#allocation5 + $0x500] sm:$0xf]  ;;  %v3427_v15 = vld [vmem:[#allocation5 + $0x2f0] sm:$0xf0] }
  0x4d   :  { %1402 = vmatpush.bf16.msrb.mxu1 %v3762_v27  ;;  %v4645_v11 = vld [vmem:[#allocation5 + $0x50c] sm:$0xf0]  ;;  %v4607_v16 = vld [vmem:[#allocation5 + $0x3e4] sm:$0xf]  ;;  %v3555_v17 = vld [vmem:[#allocation5 + $0x3f0] sm:$0xf0]  ;;  %v3570_v20 = vor.u32 %v4613_v8, %v3569_v4 }
  0x4e   :  { %1440 = vmatpush.bf16.msra.mxu2 %v3270_v23  ;;  %v4639_v21 = vld [vmem:[#allocation5 + $0x4e4] sm:$0xf]  ;;  %v3683_v22 = vld [vmem:[#allocation5 + $0x4f0] sm:$0xf0]  ;;  %v335_v23 = vunpack.c.h.b16 %v118_v5  ;;  %v3698_v24 = vor.u32 %v4645_v11, %v3697_v10  ;;  %v3558_v29 = vor.u32 %v4607_v16, %v3555_v17 }
  0x4f   :  { %1428 = vmatpush.bf16.msrb.mxu3 %v3126_v28  ;;  %v4515_v26 = vld [vmem:[#allocation5 + $0x104] sm:$0xf]  ;;  %v3187_v27 = vld [vmem:[#allocation5 + $0x110] sm:$0xf0]  ;;  %v3430_v28 = vor.u32 %v4575_v14, %v3427_v15  ;;  %v3686_v33 = vor.u32 %v4639_v21, %v3683_v22 }
  0x50   :  { %1390 = vmatpush.bf16.msrb.mxu0 %v3618_v37  ;;  %3839 = vmatmul.msk.bf16.vlgmr.msrb.gmra.mxu2 %vm1330_vm0, %v5114_v48  ;;  %v4671_v30 = vld [vmem:[#allocation5 + $0x5e4] sm:$0xf]  ;;  %v3811_v31 = vld [vmem:[#allocation5 + $0x5f0] sm:$0xf0]  ;;  %v3190_v38 = vor.u32 %v4515_v26, %v3187_v27  ;;  %v5120_v39 = vpack.c.b16 %v335_v23, %v335_v23 }
  0x51   :  { %1403 = vmatpush.bf16.msrb.mxu1 %v3746_v40  ;;  %v4571_v32 = vld [vmem:[#allocation5 + $0x2c4] sm:$0xf]  ;;  %v3411_v35 = vld [vmem:[#allocation5 + $0x2d0] sm:$0xf0]  ;;  %v3814_v42 = vor.u32 %v4671_v30, %v3811_v31 }
  0x52   :  { %1441 = vmatpush.bf16.msra.mxu2 %v3254_v36  ;;  %v4603_v36 = vld [vmem:[#allocation5 + $0x3c4] sm:$0xf]  ;;  %v3539_v37 = vld [vmem:[#allocation5 + $0x3d0] sm:$0xf0]  ;;  %v3414_v43 = vor.u32 %v4571_v32, %v3411_v35 }
  0x53   :  { %1429 = vmatpush.bf16.msrb.mxu3 %v3110_v41  ;;  %v4635_v40 = vld [vmem:[#allocation5 + $0x4c4] sm:$0xf]  ;;  %v3667_v41 = vld [vmem:[#allocation5 + $0x4d0] sm:$0xf0]  ;;  %v3542_v44 = vor.u32 %v4603_v36, %v3539_v37 }
  0x54   :  { %1391 = vmatpush.bf16.msrb.mxu0 %v3602_v50  ;;  %v4667_v45 = vld [vmem:[#allocation5 + $0x5c4] sm:$0xf]  ;;  %v3795_v46 = vld [vmem:[#allocation5 + $0x5d0] sm:$0xf0] }
  0x55   :  { %1404 = vmatpush.bf16.msrb.mxu1 %v3730_v54  ;;  %v4567_v47 = vld [vmem:[#allocation5 + $0x2a4] sm:$0xf]  ;;  %v3395_v50 = vld [vmem:[#allocation5 + $0x2b0] sm:$0xf0]  ;;  %v3798_v56 = vor.u32 %v4667_v45, %v3795_v46 }
  0x56   :  { %1442 = vmatpush.bf16.msra.mxu2 %v3238_v49  ;;  %v3670_v49 = vor.u32 %v4635_v40, %v3667_v41  ;;  %v4599_v51 = vld [vmem:[#allocation5 + $0x3a4] sm:$0xf]  ;;  %v3523_v52 = vld [vmem:[#allocation5 + $0x3b0] sm:$0xf0]  ;;  %v3398_v58 = vor.u32 %v4567_v47, %v3395_v50 }
  0x57   :  { %1430 = vmatpush.bf16.msrb.mxu3 %v3094_v55  ;;  %v4631_v54 = vld [vmem:[#allocation5 + $0x4a4] sm:$0xf]  ;;  %v3651_v55 = vld [vmem:[#allocation5 + $0x4b0] sm:$0xf0]  ;;  %v3526_v59 = vor.u32 %v4599_v51, %v3523_v52 }
  0x58   :  { %1392 = vmatpush.bf16.msrb.mxu0 %v3586_v2  ;;  %v4663_v61 = vld [vmem:[#allocation5 + $0x5a4] sm:$0xf]  ;;  %v3779_v62 = vld [vmem:[#allocation5 + $0x5b0] sm:$0xf0]  ;;  %v3654_v0 = vor.u32 %v4631_v54, %v3651_v55 }
  0x59   :  { %1405 = vmatpush.bf16.msrb.mxu1 %v3714_v6  ;;  %v4563_v63 = vld [vmem:[#allocation5 + $0x284] sm:$0xf]  ;;  %v3507_v3 = vld [vmem:[#allocation5 + $0x390] sm:$0xf0]  ;;  %v3782_v6 = vor.u32 %v4663_v61, %v3779_v62  ;;  %v3177_v61 = vld [vmem:[#allocation5 + $0xe8] sm:$0xf] }
  0x5a   :  { %1443 = vmatpush.bf16.msra.mxu2 %v3222_v1  ;;  %v3379_v1 = vld [vmem:[#allocation5 + $0x290] sm:$0xf0]  ;;  %v4595_v2 = vld [vmem:[#allocation5 + $0x384] sm:$0xf]  ;;  %v4514_v62 = vld [vmem:[#allocation5 + $0xf4] sm:$0xf0] }
  0x5b   :  { %1431 = vmatpush.bf16.msrb.mxu3 %v3078_v7  ;;  %v4627_v4 = vld [vmem:[#allocation5 + $0x484] sm:$0xf]  ;;  %v3635_v5 = vld [vmem:[#allocation5 + $0x490] sm:$0xf0]  ;;  %v3382_v7 = vor.u32 %v4563_v63, %v3379_v1  ;;  %v3510_v8 = vor.u32 %v4595_v2, %v3507_v3  ;;  %v3433_v2 = vld [vmem:[#allocation5 + $0x2e8] sm:$0xf] }
  0x5c   :  { %1393 = vmatpush.bf16.msrb.mxu0 %v3570_v20  ;;  %v4659_v10 = vld [vmem:[#allocation5 + $0x584] sm:$0xf]  ;;  %v3763_v11 = vld [vmem:[#allocation5 + $0x590] sm:$0xf0]  ;;  %v3638_v13 = vor.u32 %v4627_v4, %v3635_v5  ;;  %v4578_v3 = vld [vmem:[#allocation5 + $0x2f4] sm:$0xf0] }
  0x5d   :  { %1406 = vmatpush.bf16.msrb.mxu1 %v3698_v24  ;;  %v4559_v12 = vld [vmem:[#allocation5 + $0x264] sm:$0xf]  ;;  %v3363_v14 = vld [vmem:[#allocation5 + $0x270] sm:$0xf0] }
  0x5e   :  { %1444 = vmatpush.bf16.msra.mxu2 %v3206_v19  ;;  %v4591_v15 = vld [vmem:[#allocation5 + $0x364] sm:$0xf]  ;;  %v3491_v16 = vld [vmem:[#allocation5 + $0x370] sm:$0xf0]  ;;  %v3766_v19 = vor.u32 %v4659_v10, %v3763_v11  ;;  %v3366_v20 = vor.u32 %v4559_v12, %v3363_v14  ;;  %v3178_v10 = vor.u32 %v4514_v62, %v3177_v61  ;;  %v3561_v11 = vld [vmem:[#allocation5 + $0x3e8] sm:$0xf] }
  0x5f   :  { %1432 = vmatpush.bf16.msrb.mxu3 %v3062_v25  ;;  %1394 = vmatmul.bf16.vlgmr.msrb.gmra.mxu0 %v5118_v34  ;;  %v4623_v17 = vld [vmem:[#allocation5 + $0x464] sm:$0xf]  ;;  %v3619_v18 = vld [vmem:[#allocation5 + $0x470] sm:$0xf0]  ;;  %v3494_v21 = vor.u32 %v4591_v15, %v3491_v16  ;;  %v4610_v12 = vld [vmem:[#allocation5 + $0x3f4] sm:$0xf0]  ;;  %v3434_v16 = vor.u32 %v4578_v3, %v3433_v2 }
  0x60   :  { %1451 = vmatpush.bf16.msra.mxu0 %v3430_v28  ;;  %1407 = vmatmul.bf16.vlgmr.msrb.gmra.mxu1 %v5120_v39  ;;  %v4655_v22 = vld [vmem:[#allocation5 + $0x564] sm:$0xf]  ;;  %v3747_v23 = vld [vmem:[#allocation5 + $0x570] sm:$0xf0]  ;;  %v3622_v25 = vor.u32 %v4623_v17, %v3619_v18  ;;  %v3305_v14 = vld [vmem:[#allocation5 + $0x1e8] sm:$0xf] }
  0x61   :  { %1464 = vmatpush.bf16.msra.mxu1 %v3558_v29  ;;  %v4555_v24 = vld [vmem:[#allocation5 + $0x244] sm:$0xf]  ;;  %v3347_v26 = vld [vmem:[#allocation5 + $0x250] sm:$0xf0]  ;;  %v3750_v31 = vor.u32 %v4655_v22, %v3747_v23  ;;  %v4546_v15 = vld [vmem:[#allocation5 + $0x1f4] sm:$0xf0] }
  0x62   :  { %1445 = vmatpush.bf16.msra.mxu2 %v3190_v38  ;;  %1433 = vmatmul.bf16.vlgmr.msrb.gmra.mxu3 %v5104_v57  ;;  %v4587_v27 = vld [vmem:[#allocation5 + $0x344] sm:$0xf]  ;;  %v3475_v28 = vld [vmem:[#allocation5 + $0x350] sm:$0xf0]  ;;  %v3161_v18 = vld [vmem:[#allocation5 + $0xc8] sm:$0xf]  ;;  %v3306_v23 = vor.u32 %v4546_v15, %v3305_v14 }
  0x63   :  { %1477 = vmatpush.bf16.msra.mxu3 %v3686_v33  ;;  %v4619_v29 = vld [vmem:[#allocation5 + $0x444] sm:$0xf]  ;;  %v3603_v30 = vld [vmem:[#allocation5 + $0x450] sm:$0xf0]  ;;  %v3350_v33 = vor.u32 %v4555_v24, %v3347_v26  ;;  %v3478_v35 = vor.u32 %v4587_v27, %v3475_v28  ;;  %v4574_v22 = vld [vmem:[#allocation5 + $0x2d4] sm:$0xf0] }
  0x64   :  { %1452 = vmatpush.bf16.msra.mxu0 %v3414_v43  ;;  %v4651_v32 = vld [vmem:[#allocation5 + $0x544] sm:$0xf]  ;;  %v3731_v36 = vld [vmem:[#allocation5 + $0x550] sm:$0xf0]  ;;  %v3606_v40 = vor.u32 %v4619_v29, %v3603_v30  ;;  %v3545_v24 = vld [vmem:[#allocation5 + $0x3c8] sm:$0xf] }
  0x65   :  { %1465 = vmatpush.bf16.msra.mxu1 %v3542_v44  ;;  %1446 = vmatmul.bf16.vlgmr.msra.gmra.mxu2 %v5110_v9  ;;  %v4551_v37 = vld [vmem:[#allocation5 + $0x224] sm:$0xf]  ;;  %v3331_v38 = vld [vmem:[#allocation5 + $0x230] sm:$0xf0]  ;;  %v3734_v45 = vor.u32 %v4651_v32, %v3731_v36  ;;  %v3289_v27 = vld [vmem:[#allocation5 + $0x1c8] sm:$0xf] }
  0x66   :  { %1490 = vmatpush.bf16.msrb.mxu2 %v3814_v42  ;;  %v4583_v41 = vld [vmem:[#allocation5 + $0x324] sm:$0xf]  ;;  %v3459_v42 = vld [vmem:[#allocation5 + $0x330] sm:$0xf0]  ;;  %v4542_v28 = vld [vmem:[#allocation5 + $0x1d4] sm:$0xf0] }
  0x67   :  { %1478 = vmatpush.bf16.msra.mxu3 %v3670_v49  ;;  %v4615_v43 = vld [vmem:[#allocation5 + $0x424] sm:$0xf]  ;;  %v3587_v44 = vld [vmem:[#allocation5 + $0x430] sm:$0xf0]  ;;  %v3334_v49 = vor.u32 %v4551_v37, %v3331_v38  ;;  %v3462_v50 = vor.u32 %v4583_v41, %v3459_v42  ;;  %v3145_v30 = vld [vmem:[#allocation5 + $0xa8] sm:$0xf]  ;;  %v3290_v36 = vor.u32 %v4542_v28, %v3289_v27 }
  0x68   :  { %1453 = vmatpush.bf16.msra.mxu0 %v3398_v58  ;;  %v4647_v46 = vld [vmem:[#allocation5 + $0x524] sm:$0xf]  ;;  %v3715_v47 = vld [vmem:[#allocation5 + $0x530] sm:$0xf0]  ;;  %v3590_v55 = vor.u32 %v4615_v43, %v3587_v44  ;;  %v3529_v37 = vld [vmem:[#allocation5 + $0x3a8] sm:$0xf] }
  0x69   :  { %1466 = vmatpush.bf16.msra.mxu1 %v3526_v59  ;;  %v4547_v51 = vld [vmem:[#allocation5 + $0x204] sm:$0xf]  ;;  %v3315_v52 = vld [vmem:[#allocation5 + $0x210] sm:$0xf0]  ;;  %v4602_v38 = vld [vmem:[#allocation5 + $0x3b4] sm:$0xf0] }
  0x6a   :  { %1491 = vmatpush.bf16.msrb.mxu2 %v3798_v56  ;;  %v4579_v54 = vld [vmem:[#allocation5 + $0x304] sm:$0xf]  ;;  %v3443_v56 = vld [vmem:[#allocation5 + $0x310] sm:$0xf0]  ;;  %v3318_v4 = vor.u32 %v4547_v51, %v3315_v52  ;;  %v3273_v41 = vld [vmem:[#allocation5 + $0x1a8] sm:$0xf] }
  0x6b   :  { %1479 = vmatpush.bf16.msra.mxu3 %v3654_v0  ;;  %v4611_v58 = vld [vmem:[#allocation5 + $0x404] sm:$0xf]  ;;  %v3571_v59 = vld [vmem:[#allocation5 + $0x410] sm:$0xf0]  ;;  %v3718_v0 = vor.u32 %v4647_v46, %v3715_v47  ;;  %v3446_v5 = vor.u32 %v4579_v54, %v3443_v56  ;;  %v4538_v42 = vld [vmem:[#allocation5 + $0x1b4] sm:$0xf0]  ;;  %v3530_v46 = vor.u32 %v4602_v38, %v3529_v37 }
  0x6c   :  { %1454 = vmatpush.bf16.msra.mxu0 %v3382_v7  ;;  %v4675_v63 = vld [vmem:[#allocation5 + $0x604] sm:$0xf]  ;;  %v3827_v1 = vld [vmem:[#allocation5 + $0x610] sm:$0xf0]  ;;  %v3129_v44 = vld [vmem:[#allocation5 + $0x88] sm:$0xf] }
  0x6d   :  { %1467 = vmatpush.bf16.msra.mxu1 %v3510_v8  ;;  %v3699_v7 = vld [vmem:[#allocation5 + $0x510] sm:$0xf0]  ;;  %v3574_v8 = vor.u32 %v4611_v58, %v3571_v59  ;;  %v3385_v47 = vld [vmem:[#allocation5 + $0x288] sm:$0xf]  ;;  %v4598_v52 = vld [vmem:[#allocation5 + $0x394] sm:$0xf0] }
  0x6e   :  { %1492 = vmatpush.bf16.msrb.mxu2 %v3782_v6  ;;  %v4643_v6 = vld [vmem:[#allocation5 + $0x504] sm:$0xf]  ;;  %v3513_v51 = vld [vmem:[#allocation5 + $0x388] sm:$0xf]  ;;  %v4534_v56 = vld [vmem:[#allocation5 + $0x194] sm:$0xf0] }
  0x6f   :  { %1480 = vmatpush.bf16.msra.mxu3 %v3638_v13  ;;  %v3830_v13 = vor.u32 %v4675_v63, %v3827_v1  ;;  %v3702_v17 = vor.u32 %v4643_v6, %v3699_v7  ;;  %v3113_v59 = vld [vmem:[#allocation5 + $0x68] sm:$0xf]  ;;  %v4498_v61 = vld [vmem:[#allocation5 + $0x74] sm:$0xf0]  ;;  %v3514_v62 = vor.u32 %v4598_v52, %v3513_v51  ;;  %v4512_v51 = vld [vmem:[#allocation5 + $0xec] sm:$0xf] }
  0x70   :  { %1455 = vmatpush.bf16.msra.mxu0 %v3366_v20  ;;  %v3562_v20 = vor.u32 %v4610_v12, %v3561_v11  ;;  %v3369_v63 = vld [vmem:[#allocation5 + $0x268] sm:$0xf]  ;;  %v4594_v3 = vld [vmem:[#allocation5 + $0x374] sm:$0xf0]  ;;  %v3179_v52 = vld [vmem:[#allocation5 + $0xf8] sm:$0xf0] }
  0x71   :  { %1468 = vmatpush.bf16.msra.mxu1 %v3494_v21  ;;  %v3417_v21 = vld [vmem:[#allocation5 + $0x2c8] sm:$0xf]  ;;  %v4530_v6 = vld [vmem:[#allocation5 + $0x174] sm:$0xf0] }
  0x72   :  { %1493 = vmatpush.bf16.msrb.mxu2 %v3766_v19  ;;  %v4510_v19 = vld [vmem:[#allocation5 + $0xd4] sm:$0xf0]  ;;  %v3418_v29 = vor.u32 %v4574_v22, %v3417_v21  ;;  %v3497_v2 = vld [vmem:[#allocation5 + $0x368] sm:$0xf] }
  0x73   :  { %1481 = vmatpush.bf16.msra.mxu3 %v3622_v25  ;;  %v4606_v25 = vld [vmem:[#allocation5 + $0x3d4] sm:$0xf0]  ;;  %v3162_v26 = vor.u32 %v4510_v19, %v3161_v18  ;;  %v3498_v11 = vor.u32 %v4594_v3, %v3497_v2  ;;  %v3353_v12 = vld [vmem:[#allocation5 + $0x248] sm:$0xf]  ;;  %v3182_v3 = vor.u32 %v4512_v51, %v3179_v52 }
  0x74   :  { %1456 = vmatpush.bf16.msra.mxu0 %v3350_v33  ;;  %v3546_v32 = vor.u32 %v4606_v25, %v3545_v24  ;;  %v3401_v33 = vld [vmem:[#allocation5 + $0x2a8] sm:$0xf]  ;;  %v4526_v19 = vld [vmem:[#allocation5 + $0x154] sm:$0xf0] }
  0x75   :  { %1469 = vmatpush.bf16.msra.mxu1 %v3478_v35  ;;  %v4570_v35 = vld [vmem:[#allocation5 + $0x2b4] sm:$0xf0]  ;;  %v3481_v15 = vld [vmem:[#allocation5 + $0x348] sm:$0xf] }
  0x76   :  { %1494 = vmatpush.bf16.msrb.mxu2 %v3750_v31  ;;  %v4506_v31 = vld [vmem:[#allocation5 + $0xb4] sm:$0xf0]  ;;  %v3402_v43 = vor.u32 %v4570_v35, %v3401_v33  ;;  %v3225_v18 = vld [vmem:[#allocation5 + $0x148] sm:$0xf] }
  0x77   :  { %1482 = vmatpush.bf16.msra.mxu3 %v3606_v40  ;;  %v3146_v40 = vor.u32 %v4506_v31, %v3145_v30  ;;  %v3081_v21 = vld [vmem:[#allocation5 + $0x28] sm:$0xf]  ;;  %v4490_v22 = vld [vmem:[#allocation5 + $0x34] sm:$0xf0] }
  0x78   :  { %1457 = vmatpush.bf16.msra.mxu0 %v3334_v49  ;;  %v4566_v49 = vld [vmem:[#allocation5 + $0x294] sm:$0xf0]  ;;  %v3337_v24 = vld [vmem:[#allocation5 + $0x228] sm:$0xf] }
  0x79   :  { %1470 = vmatpush.bf16.msra.mxu1 %v3462_v50  ;;  %v3274_v50 = vor.u32 %v4538_v42, %v3273_v41  ;;  %v3386_v58 = vor.u32 %v4566_v49, %v3385_v47  ;;  %v4554_v25 = vld [vmem:[#allocation5 + $0x234] sm:$0xf0]  ;;  %v3465_v27 = vld [vmem:[#allocation5 + $0x328] sm:$0xf] }
  0x7a   :  { %1495 = vmatpush.bf16.msrb.mxu2 %v3734_v45  ;;  %v4502_v45 = vld [vmem:[#allocation5 + $0x94] sm:$0xf0]  ;;  %v3209_v30 = vld [vmem:[#allocation5 + $0x128] sm:$0xf]  ;;  %v3338_v33 = vor.u32 %v4554_v25, %v3337_v24 }
  0x7b   :  { %1483 = vmatpush.bf16.msra.mxu3 %v3590_v55  ;;  %v3130_v54 = vor.u32 %v4502_v45, %v3129_v44  ;;  %v3257_v55 = vld [vmem:[#allocation5 + $0x188] sm:$0xf]  ;;  %v4586_v28 = vld [vmem:[#allocation5 + $0x334] sm:$0xf0] }
  0x7c   :  { %1458 = vmatpush.bf16.msra.mxu0 %v3318_v4  ;;  %v3258_v1 = vor.u32 %v4534_v56, %v3257_v55  ;;  %v3114_v4 = vor.u32 %v4498_v61, %v3113_v59  ;;  %v4522_v31 = vld [vmem:[#allocation5 + $0x134] sm:$0xf0]  ;;  %v3466_v38 = vor.u32 %v4586_v28, %v3465_v27  ;;  %v3321_v41 = vld [vmem:[#allocation5 + $0x208] sm:$0xf]  ;;  %v3275_v27 = vld [vmem:[#allocation5 + $0x1b8] sm:$0xf0] }
  0x7d   :  { %1471 = vmatpush.bf16.msra.mxu1 %v3446_v5  ;;  %v3241_v5 = vld [vmem:[#allocation5 + $0x168] sm:$0xf]  ;;  %v4486_v35 = vld [vmem:[#allocation5 + $0x14] sm:$0xf0]  ;;  %v3210_v44 = vor.u32 %v4522_v31, %v3209_v30  ;;  %v4500_v30 = vld [vmem:[#allocation5 + $0x8c] sm:$0xf] }
  0x7e   :  { %1496 = vmatpush.bf16.msrb.mxu2 %v3718_v0  ;;  %v4562_v0 = vld [vmem:[#allocation5 + $0x274] sm:$0xf0]  ;;  %v3242_v14 = vor.u32 %v4530_v6, %v3241_v5  ;;  %v3817_v56 = vld [vmem:[#allocation5 + $0x5e8] sm:$0xf]  ;;  %v4508_v5 = vld [vmem:[#allocation5 + $0xcc] sm:$0xf] }
  0x7f   :  { %1484 = vmatpush.bf16.msra.mxu3 %v3574_v8  ;;  %1459 = vmatmul.bf16.vlgmr.msra.gmra.mxu0 %v5102_v53  ;;  %v3370_v7 = vor.u32 %v4562_v0, %v3369_v63  ;;  %v3097_v8 = vld [vmem:[#allocation5 + $0x48] sm:$0xf]  ;;  %v4642_v37 = vld [vmem:[#allocation5 + $0x4f4] sm:$0xf0]  ;;  %v4544_v0 = vld [vmem:[#allocation5 + $0x1ec] sm:$0xf] }
  0x80   :  { %1542 = vmatpush.bf16.msrb.mxu0 %v3434_v16  ;;  %1472 = vmatmul.bf16.vlgmr.msra.gmra.mxu1 %v5106_v60  ;;  %v4590_v16 = vld [vmem:[#allocation5 + $0x354] sm:$0xf0]  ;;  %v3673_v59 = vld [vmem:[#allocation5 + $0x4c8] sm:$0xf]  ;;  %v3163_v6 = vld [vmem:[#allocation5 + $0xd8] sm:$0xf0] }
  0x81   :  { %1516 = vmatpush.bf16.msrb.mxu1 %v3178_v10  ;;  %v4494_v10 = vld [vmem:[#allocation5 + $0x54] sm:$0xf0]  ;;  %v3641_v24 = vld [vmem:[#allocation5 + $0x488] sm:$0xf]  ;;  %v3131_v31 = vld [vmem:[#allocation5 + $0x98] sm:$0xf0] }
  0x82   :  { %1497 = vmatpush.bf16.msrb.mxu2 %v3702_v17  ;;  %1485 = vmatmul.bf16.vlgmr.msra.gmra.mxu3 %v5118_v34  ;;  %v3098_v17 = vor.u32 %v4494_v10, %v3097_v8  ;;  %v4550_v42 = vld [vmem:[#allocation5 + $0x214] sm:$0xf0]  ;;  %v3801_v10 = vld [vmem:[#allocation5 + $0x5c8] sm:$0xf] }
  0x83   :  { %1510 = vmatpush.bf16.msrb.mxu3 %v3830_v13  ;;  %v4558_v13 = vld [vmem:[#allocation5 + $0x254] sm:$0xf0]  ;;  %v3322_v55 = vor.u32 %v4550_v42, %v3321_v41  ;;  %v3259_v41 = vld [vmem:[#allocation5 + $0x198] sm:$0xf0]  ;;  %v3134_v42 = vor.u32 %v4500_v30, %v3131_v31  ;;  %v3609_v51 = vld [vmem:[#allocation5 + $0x448] sm:$0xf] }
  0x84   :  { %1543 = vmatpush.bf16.msrb.mxu0 %v3418_v29  ;;  %v3082_v29 = vor.u32 %v4490_v22, %v3081_v21  ;;  %v4582_v45 = vld [vmem:[#allocation5 + $0x314] sm:$0xf0]  ;;  %v3785_v22 = vld [vmem:[#allocation5 + $0x5a8] sm:$0xf]  ;;  %v3563_v30 = vld [vmem:[#allocation5 + $0x3f8] sm:$0xf0] }
  0x85   :  { %1517 = vmatpush.bf16.msrb.mxu1 %v3162_v26  ;;  %1498 = vmatmul.bf16.vlgmr.msrb.gmra.mxu2 %v5120_v39  ;;  %v3226_v26 = vor.u32 %v4526_v19, %v3225_v18  ;;  %v4678_v47 = vld [vmem:[#allocation5 + $0x614] sm:$0xf0]  ;;  %v4504_v18 = vld [vmem:[#allocation5 + $0xac] sm:$0xf]  ;;  %v3147_v19 = vld [vmem:[#allocation5 + $0xb8] sm:$0xf0] }
  0x86   :  { %1555 = vmatpush.bf16.msra.mxu2 %v3562_v20  ;;  %v3354_v20 = vor.u32 %v4558_v13, %v3353_v12  ;;  %v3657_v12 = vld [vmem:[#allocation5 + $0x4a8] sm:$0xf]  ;;  %v4634_v13 = vld [vmem:[#allocation5 + $0x4b4] sm:$0xf0]  ;;  %v3150_v28 = vor.u32 %v4504_v18, %v3147_v19  ;;  %v3211_v18 = vld [vmem:[#allocation5 + $0x138] sm:$0xf0] }
  0x87   :  { %1529 = vmatpush.bf16.msra.mxu3 %v3306_v23  ;;  %v3482_v23 = vor.u32 %v4590_v16, %v3481_v15  ;;  %v3291_v15 = vld [vmem:[#allocation5 + $0x1d8] sm:$0xf0]  ;;  %v3166_v16 = vor.u32 %v4508_v5, %v3163_v6  ;;  %v4630_v25 = vld [vmem:[#allocation5 + $0x494] sm:$0xf0] }
  0x88   :  { %1544 = vmatpush.bf16.msrb.mxu0 %v3402_v43  ;;  %v3449_v43 = vld [vmem:[#allocation5 + $0x308] sm:$0xf]  ;;  %v4622_v52 = vld [vmem:[#allocation5 + $0x454] sm:$0xf0]  ;;  %v3227_v5 = vld [vmem:[#allocation5 + $0x158] sm:$0xf0] }
  0x89   :  { %1518 = vmatpush.bf16.msrb.mxu1 %v3146_v40  ;;  %v3193_v40 = vld [vmem:[#allocation5 + $0x108] sm:$0xf]  ;;  %v3450_v61 = vor.u32 %v4582_v45, %v3449_v43  ;;  %v3115_v45 = vld [vmem:[#allocation5 + $0x78] sm:$0xf0] }
  0x8a   :  { %1556 = vmatpush.bf16.msra.mxu2 %v3546_v32  ;;  %v3065_v32 = vld [vmem:[#allocation5 + $0x8] sm:$0xf] }
  0x8b   :  { %1530 = vmatpush.bf16.msra.mxu3 %v3290_v36  ;;  %v3689_v36 = vld [vmem:[#allocation5 + $0x4e8] sm:$0xf]  ;;  %v3066_v49 = vor.u32 %v4486_v35, %v3065_v32  ;;  %v3642_v32 = vor.u32 %v4630_v25, %v3641_v24  ;;  %v4484_v24 = vld [vmem:[#allocation5 + $0xc] sm:$0xf]  ;;  %v3067_v25 = vld [vmem:[#allocation5 + $0x18] sm:$0xf0] }
  0x8c   :  { %1545 = vmatpush.bf16.msrb.mxu0 %v3386_v58  ;;  %v4674_v58 = vld [vmem:[#allocation5 + $0x5f4] sm:$0xf0]  ;;  %v3769_v35 = vld [vmem:[#allocation5 + $0x588] sm:$0xf] }
  0x8d   :  { %1519 = vmatpush.bf16.msrb.mxu1 %v3130_v54  ;;  %v3690_v54 = vor.u32 %v4642_v37, %v3689_v36  ;;  %v4662_v36 = vld [vmem:[#allocation5 + $0x594] sm:$0xf0]  ;;  %v3625_v37 = vld [vmem:[#allocation5 + $0x468] sm:$0xf] }
  0x8e   :  { %1557 = vmatpush.bf16.msra.mxu2 %v3530_v46  ;;  %v3833_v46 = vld [vmem:[#allocation5 + $0x608] sm:$0xf]  ;;  %v3770_v43 = vor.u32 %v4662_v36, %v3769_v35  ;;  %v4572_v35 = vld [vmem:[#allocation5 + $0x2cc] sm:$0xf]  ;;  %v3070_v36 = vor.u32 %v4484_v24, %v3067_v25 }
  0x8f   :  { %1531 = vmatpush.bf16.msra.mxu3 %v3274_v50  ;;  %v4518_v50 = vld [vmem:[#allocation5 + $0x114] sm:$0xf0]  ;;  %v3834_v63 = vor.u32 %v4678_v47, %v3833_v46  ;;  %v4592_v24 = vld [vmem:[#allocation5 + $0x36c] sm:$0xf] }
  0x90   :  { %1546 = vmatpush.bf16.msrb.mxu0 %v3370_v7  ;;  %v3194_v2 = vor.u32 %v4518_v50, %v3193_v40  ;;  %v4532_v40 = vld [vmem:[#allocation5 + $0x18c] sm:$0xf]  ;;  %v4658_v50 = vld [vmem:[#allocation5 + $0x574] sm:$0xf0] }
  0x91   :  { %1520 = vmatpush.bf16.msrb.mxu1 %v3114_v4  ;;  %v3818_v4 = vor.u32 %v4674_v58, %v3817_v56  ;;  %v3262_v47 = vor.u32 %v4532_v40, %v3259_v41  ;;  %v3195_v40 = vld [vmem:[#allocation5 + $0x118] sm:$0xf0] }
  0x92   :  { %1558 = vmatpush.bf16.msra.mxu2 %v3514_v62  ;;  %3840 = vmatmul.msk.bf16.vlgmr.msrb.gmra.mxu3 %vm1330_vm0, %v5114_v48  ;;  %v4638_v62 = vld [vmem:[#allocation5 + $0x4d4] sm:$0xf0] }
  0x93   :  { %1532 = vmatpush.bf16.msra.mxu3 %v3258_v1  ;;  %v3307_v1 = vld [vmem:[#allocation5 + $0x1f8] sm:$0xf0]  ;;  %v3674_v7 = vor.u32 %v4638_v62, %v3673_v59  ;;  %v4492_v59 = vld [vmem:[#allocation5 + $0x4c] sm:$0xf]  ;;  %v3610_v62 = vor.u32 %v4622_v52, %v3609_v51 }
  0x94   :  { %1547 = vmatpush.bf16.msrb.mxu0 %v3354_v20  ;;  %v3310_v8 = vor.u32 %v4544_v0, %v3307_v1  ;;  %v3658_v20 = vor.u32 %v4634_v13, %v3657_v12  ;;  %v3737_v0 = vld [vmem:[#allocation5 + $0x548] sm:$0xf]  ;;  %v4654_v1 = vld [vmem:[#allocation5 + $0x554] sm:$0xf0]  ;;  %v4636_v51 = vld [vmem:[#allocation5 + $0x4cc] sm:$0xf] }
  0x95   :  { %1521 = vmatpush.bf16.msrb.mxu1 %v3098_v17  ;;  %v3721_v13 = vld [vmem:[#allocation5 + $0x528] sm:$0xf]  ;;  %v3675_v52 = vld [vmem:[#allocation5 + $0x4d8] sm:$0xf0] }
  0x96   :  { %1559 = vmatpush.bf16.msra.mxu2 %v3498_v11  ;;  %v4670_v11 = vld [vmem:[#allocation5 + $0x5d4] sm:$0xf0] }
  0x97   :  { %1533 = vmatpush.bf16.msra.mxu3 %v3242_v14  ;;  %v4540_v14 = vld [vmem:[#allocation5 + $0x1cc] sm:$0xf]  ;;  %v3802_v17 = vor.u32 %v4670_v11, %v3801_v10  ;;  %v3083_v10 = vld [vmem:[#allocation5 + $0x38] sm:$0xf0] }
  0x98   :  { %1548 = vmatpush.bf16.msrb.mxu0 %v3338_v33  ;;  %v3294_v21 = vor.u32 %v4540_v14, %v3291_v15  ;;  %v4650_v14 = vld [vmem:[#allocation5 + $0x534] sm:$0xf0]  ;;  %v3577_v15 = vld [vmem:[#allocation5 + $0x408] sm:$0xf] }
  0x99   :  { %1522 = vmatpush.bf16.msrb.mxu1 %v3082_v29 }
  0x9a   :  { %1560 = vmatpush.bf16.msra.mxu2 %v3482_v23  ;;  %v4666_v23 = vld [vmem:[#allocation5 + $0x5b4] sm:$0xf0] }
  0x9b   :  { %1534 = vmatpush.bf16.msra.mxu3 %v3226_v26  ;;  %v4536_v26 = vld [vmem:[#allocation5 + $0x1ac] sm:$0xf]  ;;  %v3786_v29 = vor.u32 %v4666_v23, %v3785_v22  ;;  %v3722_v22 = vor.u32 %v4650_v14, %v3721_v13  ;;  %v3705_v23 = vld [vmem:[#allocation5 + $0x508] sm:$0xf]  ;;  %v3515_v14 = vld [vmem:[#allocation5 + $0x398] sm:$0xf0] }
  0x9c   :  { %1549 = vmatpush.bf16.msrb.mxu0 %v3322_v55  ;;  %v3278_v33 = vor.u32 %v4536_v26, %v3275_v27  ;;  %v3243_v55 = vld [vmem:[#allocation5 + $0x178] sm:$0xf0] }
  0x9d   :  { %1523 = vmatpush.bf16.msrb.mxu1 %v3066_v49  ;;  %v3753_v49 = vld [vmem:[#allocation5 + $0x568] sm:$0xf] }
  0x9e   :  { %1561 = vmatpush.bf16.msra.mxu2 %v3466_v38  ;;  %v4626_v38 = vld [vmem:[#allocation5 + $0x474] sm:$0xf0]  ;;  %v3754_v58 = vor.u32 %v4658_v50, %v3753_v49  ;;  %v3547_v50 = vld [vmem:[#allocation5 + $0x3d8] sm:$0xf0] }
  0x9f   :  { %1535 = vmatpush.bf16.msra.mxu3 %v3210_v44  ;;  %1550 = vmatmul.bf16.vlgmr.msrb.gmra.mxu0 %v5102_v53  ;;  %v4496_v44 = vld [vmem:[#allocation5 + $0x6c] sm:$0xf]  ;;  %v3626_v46 = vor.u32 %v4626_v38, %v3625_v37  ;;  %v3419_v37 = vld [vmem:[#allocation5 + $0x2d8] sm:$0xf0] }
  0xa0   :  { %1601 = vmatpush.bf16.msra.mxu0 %v3834_v63  ;;  %1524 = vmatmul.bf16.vlgmr.msrb.gmra.mxu1 %v5104_v57  ;;  %v3118_v56 = vor.u32 %v4496_v44, %v3115_v45  ;;  %v4516_v38 = vld [vmem:[#allocation5 + $0x10c] sm:$0xf] }
  0xa1   :  { %1568 = vmatpush.bf16.msra.mxu1 %v3690_v54  ;;  %v4528_v54 = vld [vmem:[#allocation5 + $0x16c] sm:$0xf]  ;;  %v3198_v49 = vor.u32 %v4516_v38, %v3195_v40 }
  0xa2   :  { %1562 = vmatpush.bf16.msra.mxu2 %v3450_v61  ;;  %v3099_v61 = vld [vmem:[#allocation5 + $0x58] sm:$0xf0]  ;;  %v3246_v63 = vor.u32 %v4528_v54, %v3243_v55  ;;  %v4568_v55 = vld [vmem:[#allocation5 + $0x2ac] sm:$0xf] }
  0xa3   :  { %1536 = vmatpush.bf16.msra.mxu3 %v3194_v2  ;;  %v3593_v2 = vld [vmem:[#allocation5 + $0x428] sm:$0xf]  ;;  %v3102_v6 = vor.u32 %v4492_v59, %v3099_v61  ;;  %v3803_v59 = vld [vmem:[#allocation5 + $0x5d8] sm:$0xf0]  ;;  %v4588_v38 = vld [vmem:[#allocation5 + $0x34c] sm:$0xf] }
  0xa4   :  { %1620 = vmatpush.bf16.msrb.mxu0 %v3310_v8  ;;  %v4488_v8 = vld [vmem:[#allocation5 + $0x2c] sm:$0xf] }
  0xa5   :  { %1569 = vmatpush.bf16.msra.mxu1 %v3674_v7  ;;  %1563 = vmatmul.bf16.vlgmr.msra.gmra.mxu2 %v5106_v60  ;;  %v3738_v7 = vor.u32 %v4654_v1, %v3737_v0  ;;  %v3086_v19 = vor.u32 %v4488_v8, %v3083_v10  ;;  %v3531_v1 = vld [vmem:[#allocation5 + $0x3b8] sm:$0xf0] }
  0xa6   :  { %1607 = vmatpush.bf16.msrb.mxu2 %v3182_v3  ;;  %1537 = vmatmul.bf16.vlgmr.msra.gmra.mxu3 %v5110_v9  ;;  %v4618_v3 = vld [vmem:[#allocation5 + $0x434] sm:$0xf0]  ;;  %v3787_v8 = vld [vmem:[#allocation5 + $0x5b8] sm:$0xf0] }
  0xa7   :  { %1581 = vmatpush.bf16.msrb.mxu3 %v3818_v4  ;;  %v4524_v4 = vld [vmem:[#allocation5 + $0x14c] sm:$0xf]  ;;  %v3594_v11 = vor.u32 %v4618_v3, %v3593_v2  ;;  %v3659_v3 = vld [vmem:[#allocation5 + $0x4b8] sm:$0xf0] }
  0xa8   :  { %1621 = vmatpush.bf16.msrb.mxu0 %v3294_v21  ;;  %v3230_v12 = vor.u32 %v4524_v4, %v3227_v5  ;;  %v3435_v21 = vld [vmem:[#allocation5 + $0x2f8] sm:$0xf0]  ;;  %v4632_v2 = vld [vmem:[#allocation5 + $0x4ac] sm:$0xf] }
  0xa9   :  { %1570 = vmatpush.bf16.msra.mxu1 %v3658_v20  ;;  %v4576_v20 = vld [vmem:[#allocation5 + $0x2ec] sm:$0xf] }
  0xaa   :  { %1608 = vmatpush.bf16.msrb.mxu2 %v3166_v16  ;;  %v4614_v16 = vld [vmem:[#allocation5 + $0x414] sm:$0xf0]  ;;  %v3438_v31 = vor.u32 %v4576_v20, %v3435_v21  ;;  %v4564_v5 = vld [vmem:[#allocation5 + $0x28c] sm:$0xf]  ;;  %v3771_v21 = vld [vmem:[#allocation5 + $0x598] sm:$0xf0] }
  0xab   :  { %1582 = vmatpush.bf16.msrb.mxu3 %v3802_v17  ;;  %v4520_v17 = vld [vmem:[#allocation5 + $0x12c] sm:$0xf]  ;;  %v3578_v26 = vor.u32 %v4614_v16, %v3577_v15  ;;  %v3643_v16 = vld [vmem:[#allocation5 + $0x498] sm:$0xf0] }
  0xac   :  { %1622 = vmatpush.bf16.msrb.mxu0 %v3278_v33  ;;  %v3214_v27 = vor.u32 %v4520_v17, %v3211_v18  ;;  %v3691_v33 = vld [vmem:[#allocation5 + $0x4f8] sm:$0xf0]  ;;  %v4628_v15 = vld [vmem:[#allocation5 + $0x48c] sm:$0xf] }
  0xad   :  { %1571 = vmatpush.bf16.msra.mxu1 %v3642_v32  ;;  %v4640_v32 = vld [vmem:[#allocation5 + $0x4ec] sm:$0xf] }
  0xae   :  { %1609 = vmatpush.bf16.msrb.mxu2 %v3150_v28  ;;  %v4646_v28 = vld [vmem:[#allocation5 + $0x514] sm:$0xf0]  ;;  %v3694_v45 = vor.u32 %v4640_v32, %v3691_v33  ;;  %v4560_v18 = vld [vmem:[#allocation5 + $0x26c] sm:$0xf]  ;;  %v3755_v33 = vld [vmem:[#allocation5 + $0x578] sm:$0xf0] }
  0xaf   :  { %1583 = vmatpush.bf16.msrb.mxu3 %v3786_v29  ;;  %3841 = vmatmul.msk.bf16.vlgmr.msra.gmra.mxu0 %vm1330_vm0, %v5114_v48  ;;  %v4608_v29 = vld [vmem:[#allocation5 + $0x3ec] sm:$0xf]  ;;  %v3706_v41 = vor.u32 %v4646_v28, %v3705_v23  ;;  %v3646_v23 = vor.u32 %v4628_v15, %v3643_v16  ;;  %v3627_v28 = vld [vmem:[#allocation5 + $0x478] sm:$0xf0] }
  0xb0   :  { %1623 = vmatpush.bf16.msrb.mxu0 %v3262_v47  ;;  %v3566_v44 = vor.u32 %v4608_v29, %v3563_v30  ;;  %v3422_v47 = vor.u32 %v4572_v35, %v3419_v37  ;;  %v4556_v30 = vld [vmem:[#allocation5 + $0x24c] sm:$0xf]  ;;  %v3579_v15 = vld [vmem:[#allocation5 + $0x418] sm:$0xf0] }
  0xb1   :  { %1572 = vmatpush.bf16.msra.mxu1 %v3626_v46  ;;  %v4604_v46 = vld [vmem:[#allocation5 + $0x3cc] sm:$0xf] }
  0xb2   :  { %1610 = vmatpush.bf16.msrb.mxu2 %v3134_v42  ;;  %v4672_v42 = vld [vmem:[#allocation5 + $0x5ec] sm:$0xf]  ;;  %v3550_v61 = vor.u32 %v4604_v46, %v3547_v50 }
  0xb3   :  { %1584 = vmatpush.bf16.msrb.mxu3 %v3770_v43  ;;  %v3819_v43 = vld [vmem:[#allocation5 + $0x5f8] sm:$0xf0]  ;;  %v4656_v32 = vld [vmem:[#allocation5 + $0x56c] sm:$0xf] }
  0xb4   :  { %1624 = vmatpush.bf16.msrb.mxu0 %v3246_v63  ;;  %v3822_v54 = vor.u32 %v4672_v42, %v3819_v43  ;;  %v4600_v63 = vld [vmem:[#allocation5 + $0x3ac] sm:$0xf]  ;;  %v3483_v42 = vld [vmem:[#allocation5 + $0x358] sm:$0xf0] }
  0xb5   :  { %1573 = vmatpush.bf16.msra.mxu1 %v3610_v62  ;;  %v3678_v62 = vor.u32 %v4636_v51, %v3675_v52  ;;  %v3534_v10 = vor.u32 %v4600_v63, %v3531_v1  ;;  %v4620_v43 = vld [vmem:[#allocation5 + $0x44c] sm:$0xf]  ;;  %v3739_v51 = vld [vmem:[#allocation5 + $0x558] sm:$0xf0]  ;;  %v3486_v52 = vor.u32 %v4588_v38, %v3483_v42  ;;  %v3925_v42 = vld [vmem:[#allocation8 + $0xa0] sm:$0xf] }
  0xb6   :  { %1611 = vmatpush.bf16.msrb.mxu2 %v3118_v56  ;;  %v3403_v56 = vld [vmem:[#allocation5 + $0x2b8] sm:$0xf0]  ;;  %v4552_v46 = vld [vmem:[#allocation5 + $0x22c] sm:$0xf] }
  0xb7   :  { %1585 = vmatpush.bf16.msrb.mxu3 %v3754_v58  ;;  %v4668_v58 = vld [vmem:[#allocation5 + $0x5cc] sm:$0xf]  ;;  %v3406_v0 = vor.u32 %v4568_v55, %v3403_v56 }
  0xb8   :  { %1625 = vmatpush.bf16.msrb.mxu0 %v3230_v12  ;;  %v3806_v4 = vor.u32 %v4668_v58, %v3803_v59  ;;  %v4596_v12 = vld [vmem:[#allocation5 + $0x38c] sm:$0xf]  ;;  %v3467_v58 = vld [vmem:[#allocation5 + $0x338] sm:$0xf0] }
  0xb9   :  { %1574 = vmatpush.bf16.msra.mxu1 %v3594_v11  ;;  %v3662_v11 = vor.u32 %v4632_v2, %v3659_v3  ;;  %v4652_v50 = vld [vmem:[#allocation5 + $0x54c] sm:$0xf]  ;;  %v3723_v3 = vld [vmem:[#allocation5 + $0x538] sm:$0xf0] }
  0xba   :  { %1612 = vmatpush.bf16.msrb.mxu2 %v3102_v6  ;;  %v3387_v6 = vld [vmem:[#allocation5 + $0x298] sm:$0xf0]  ;;  %v4584_v55 = vld [vmem:[#allocation5 + $0x32c] sm:$0xf] }
  0xbb   :  { %1586 = vmatpush.bf16.msrb.mxu3 %v3738_v7  ;;  %v4664_v7 = vld [vmem:[#allocation5 + $0x5ac] sm:$0xf]  ;;  %v3390_v13 = vor.u32 %v4564_v5, %v3387_v6  ;;  %v5142_v20 = vpop.f32.mrf.mxu0  ;;  %v3835_v5 = vld [vmem:[#allocation5 + $0x618] sm:$0xf0]  ;;  %v5150_v6 = vld [vmem:[#allocation7] sm:$0xf] }
  0xbc   :  { %1626 = vmatpush.bf16.msrb.mxu0 %v3214_v27  ;;  %v3790_v17 = vor.u32 %v4664_v7, %v3787_v8  ;;  %v4624_v27 = vld [vmem:[#allocation5 + $0x46c] sm:$0xf]  ;;  %v5144_v29 = vpop.f32.mrf.mxu1  ;;  %v3470_v8 = vor.u32 %v4584_v55, %v3467_v58 }
  0xbd   :  { %1575 = vmatpush.bf16.msra.mxu1 %v3578_v26  ;;  %v3499_v26 = vld [vmem:[#allocation5 + $0x378] sm:$0xf0]  ;;  %v3630_v37 = vor.u32 %v4624_v27, %v3627_v28  ;;  %v4616_v59 = vld [vmem:[#allocation5 + $0x42c] sm:$0xf] }
  0xbe   :  { %1613 = vmatpush.bf16.msrb.mxu2 %v3086_v19  ;;  %v3371_v19 = vld [vmem:[#allocation5 + $0x278] sm:$0xf0]  ;;  %v4548_v63 = vld [vmem:[#allocation5 + $0x20c] sm:$0xf] }
  0xbf   :  { %1587 = vmatpush.bf16.msrb.mxu3 %v3722_v22  ;;  %v3518_v22 = vor.u32 %v4596_v12, %v3515_v14  ;;  %v3374_v25 = vor.u32 %v4560_v18, %v3371_v19  ;;  %v4648_v1 = vld [vmem:[#allocation5 + $0x52c] sm:$0xf]  ;;  %v3957_v18 = vld [vmem:[#allocation8 + $0xe0] sm:$0xf]  ;;  %v4709_v19 = vld [vmem:[#allocation8 + $0xec] sm:$0xf0] }
  0xc0   :  { %1576 = vmatmul.bf16.vlgmr.msra.gmra.mxu1 %v5118_v34  ;;  %1627 = vmatpush.bf16.msrb.mxu0 %v3198_v49  ;;  %v4612_v14 = vld [vmem:[#allocation5 + $0x40c] sm:$0xf]  ;;  %v3958_v28 = vor.u32 %v4709_v19, %v3957_v18  ;;  %v3845_v18 = vld [vmem:[#allocation8] sm:$0xf]  ;;  %v4681_v19 = vld [vmem:[#allocation8 + $0xc] sm:$0xf0] }
  0xc1   :  { %1633 = vmatpush.bf16.msrb.mxu1 %v3438_v31  ;;  %v3355_v31 = vld [vmem:[#allocation5 + $0x258] sm:$0xf0]  ;;  %v3582_v27 = vor.u32 %v4612_v14, %v3579_v15  ;;  %v3989_v15 = vld [vmem:[#allocation8 + $0x120] sm:$0xf] }
  0xc2   :  { %1614 = vmatpush.bf16.msrb.mxu2 %v3070_v36  ;;  %v3502_v36 = vor.u32 %v4592_v24, %v3499_v26  ;;  %v3358_v40 = vor.u32 %v4556_v30, %v3355_v31  ;;  %v4741_v24 = vld [vmem:[#allocation8 + $0x1ec] sm:$0xf0]  ;;  %v3941_v30 = vld [vmem:[#allocation8 + $0xc0] sm:$0xf] }
  0xc3   :  { %1588 = vmatpush.bf16.msrb.mxu3 %v3706_v41  ;;  %1628 = vmatmul.bf16.vlgmr.msrb.gmra.mxu0 %v5110_v9  ;;  %v5146_v35 = vpop.f32.mrf.mxu2  ;;  %v1345_v49 = vpop.f32.mrf.mxu0  ;;  %v4705_v31 = vld [vmem:[#allocation8 + $0xcc] sm:$0xf0] }
  0xc4   :  { %1672 = vmatpush.bf16.msra.mxu0 %v3822_v54  ;;  %v1358_v2 = vpop.f32.mrf.mxu1  ;;  %v4697_v49 = vld [vmem:[#allocation8 + $0x8c] sm:$0xf0] }
  0xc5   :  { %1634 = vmatpush.bf16.msrb.mxu1 %v3422_v47  ;;  %1615 = vmatmul.bf16.vlgmr.msrb.gmra.mxu2 %v5104_v57  ;;  %v4660_v57 = vld [vmem:[#allocation5 + $0x58c] sm:$0xf]  ;;  %v5148_v41 = vpop.f32.mrf.mxu3  ;;  %v3339_v47 = vld [vmem:[#allocation5 + $0x238] sm:$0xf0]  ;;  %v4689_v2 = vld [vmem:[#allocation8 + $0x4c] sm:$0xf0] }
  0xc6   :  { %1659 = vmatpush.bf16.msra.mxu2 %v3694_v45  ;;  %1589 = vmatmul.bf16.vlgmr.msrb.gmra.mxu3 %v5120_v39  ;;  %v3774_v9 = vor.u32 %v4660_v57, %v3771_v21  ;;  %v3758_v45 = vor.u32 %v4656_v32, %v3755_v33  ;;  %v3342_v56 = vor.u32 %v4552_v46, %v3339_v47  ;;  %v4644_v57 = vld [vmem:[#allocation5 + $0x50c] sm:$0xf]  ;;  %v4069_v33 = vld [vmem:[#allocation8 + $0x1c0] sm:$0xf]  ;;  %v4733_v46 = vld [vmem:[#allocation8 + $0x1ac] sm:$0xf0] }
  0xc7   :  { %1646 = vmatpush.bf16.msra.mxu3 %v3566_v44  ;;  %v3611_v44 = vld [vmem:[#allocation5 + $0x458] sm:$0xf0] }
  0xc8   :  { %1673 = vmatpush.bf16.msra.mxu0 %v3806_v4  ;;  %v3614_v54 = vor.u32 %v4620_v43, %v3611_v44  ;;  %v4676_v4 = vld [vmem:[#allocation5 + $0x60c] sm:$0xf]  ;;  %v4701_v43 = vld [vmem:[#allocation8 + $0xac] sm:$0xf0] }
  0xc9   :  { %1635 = vmatpush.bf16.msrb.mxu1 %v3406_v0  ;;  %v3323_v0 = vld [vmem:[#allocation5 + $0x218] sm:$0xf0]  ;;  %v3838_v21 = vor.u32 %v4676_v4, %v3835_v5  ;;  %v4005_v4 = vld [vmem:[#allocation8 + $0x140] sm:$0xf]  ;;  %v4721_v5 = vld [vmem:[#allocation8 + $0x14c] sm:$0xf0] }
  0xca   :  { %1660 = vmatpush.bf16.msra.mxu2 %v3678_v62  ;;  %v3742_v62 = vor.u32 %v4652_v50, %v3739_v51  ;;  %v3326_v12 = vor.u32 %v4548_v63, %v3323_v0  ;;  %v4006_v14 = vor.u32 %v4721_v5, %v4005_v4  ;;  %v4757_v4 = vld [vmem:[#allocation8 + $0x26c] sm:$0xf0]  ;;  %v319_v5 = vperm.slane %v5150_v6, 1 }
  0xcb   :  { %1647 = vmatpush.bf16.msra.mxu3 %v3550_v61  ;;  %v3595_v61 = vld [vmem:[#allocation5 + $0x438] sm:$0xf0]  ;;  %v1371_v7 = vpop.f32.mrf.mxu2 }
  0xcc   :  { %1674 = vmatpush.bf16.msra.mxu0 %v3790_v17  ;;  %v3726_v17 = vor.u32 %v4648_v1, %v3723_v3  ;;  %v3877_v1 = vld [vmem:[#allocation8 + $0x40] sm:$0xf] }
  0xcd   :  { %1636 = vmatpush.bf16.msrb.mxu1 %v3390_v13  ;;  %v3451_v13 = vld [vmem:[#allocation5 + $0x318] sm:$0xf0]  ;;  %v1384_v16 = vpop.f32.mrf.mxu3 }
  0xce   :  { %1661 = vmatpush.bf16.msra.mxu2 %v3662_v11  ;;  %v4580_v11 = vld [vmem:[#allocation5 + $0x30c] sm:$0xf]  ;;  %v4717_v16 = vld [vmem:[#allocation8 + $0x12c] sm:$0xf0] }
  0xcf   :  { %1648 = vmatpush.bf16.msra.mxu3 %v3534_v10  ;;  %v3598_v10 = vor.u32 %v4616_v59, %v3595_v61  ;;  %v3454_v26 = vor.u32 %v4580_v11, %v3451_v13  ;;  %v4693_v59 = vld [vmem:[#allocation8 + $0x6c] sm:$0xf0]  ;;  %v4021_v61 = vld [vmem:[#allocation8 + $0x160] sm:$0xf] }
  0xd0   :  { %1675 = vmatpush.bf16.msra.mxu0 %v3774_v9  ;;  %v4685_v13 = vld [vmem:[#allocation8 + $0x2c] sm:$0xf0] }
  0xd1   :  { %1637 = vmatpush.bf16.msrb.mxu1 %v3374_v25  ;;  %v318_v25 = vperm.slane %v5150_v6, 0 }
  0xd2   :  { %1662 = vmatpush.bf16.msra.mxu2 %v3646_v23  ;;  %v4085_v23 = vld [vmem:[#allocation8 + $0x1e0] sm:$0xf] }
  0xd3   :  { %1649 = vmatpush.bf16.msra.mxu3 %v3518_v22  ;;  %v3707_v22 = vld [vmem:[#allocation5 + $0x518] sm:$0xf0]  ;;  %v4086_v32 = vor.u32 %v4741_v24, %v4085_v23  ;;  %v5155_v38 = vpop.f32.mrf.mxu2  ;;  %v4773_v23 = vld [vmem:[#allocation8 + $0x2ec] sm:$0xf0] }
  0xd4   :  { %1676 = vmatpush.bf16.msra.mxu0 %v3758_v45  ;;  %v3710_v9 = vor.u32 %v4644_v57, %v3707_v22  ;;  %v4053_v45 = vld [vmem:[#allocation8 + $0x1a0] sm:$0xf] }
  0xd5   :  { %1638 = vmatpush.bf16.msrb.mxu1 %v3358_v40  ;;  %v3942_v40 = vor.u32 %v4705_v31, %v3941_v30  ;;  %v4054_v50 = vor.u32 %v4733_v46, %v4053_v45  ;;  %v4213_v22 = vld [vmem:[#allocation8 + $0x2e0] sm:$0xf]  ;;  %v4087_v30 = vld [vmem:[#allocation8 + $0x1f0] sm:$0xf0]  ;;  %v3846_v31 = vor.u32 %v4681_v19, %v3845_v18  ;;  %v4735_v46 = vld [vmem:[#allocation8 + $0x1c4] sm:$0xf] }
  0xd6   :  { %1663 = vmatpush.bf16.msra.mxu2 %v3630_v37  ;;  %v1344_v37 = vadd.f32 %v5142_v20, %v318_v25  ;;  %v3909_v20 = vld [vmem:[#allocation8 + $0x80] sm:$0xf]  ;;  %v3959_v25 = vld [vmem:[#allocation8 + $0xf0] sm:$0xf0]  ;;  %v4687_v19 = vld [vmem:[#allocation8 + $0x44] sm:$0xf] }
  0xd7   :  { %1650 = vmatpush.bf16.msra.mxu3 %v3502_v36  ;;  %v4737_v36 = vld [vmem:[#allocation8 + $0x1cc] sm:$0xf0]  ;;  %v3910_v58 = vor.u32 %v4697_v49, %v3909_v20  ;;  %v4181_v49 = vld [vmem:[#allocation8 + $0x2a0] sm:$0xf] }
  0xd8   :  { %1677 = vmatpush.bf16.msra.mxu0 %v3742_v62  ;;  %v4070_v44 = vor.u32 %v4737_v36, %v4069_v33  ;;  %v1357_v47 = vadd.f32 %v5144_v29, %v1344_v37  ;;  %v3893_v29 = vld [vmem:[#allocation8 + $0x60] sm:$0xf] }
  0xd9   :  { %1639 = vmatpush.bf16.msrb.mxu1 %v3342_v56  ;;  %v3894_v63 = vor.u32 %v4693_v59, %v3893_v29  ;;  %v4165_v29 = vld [vmem:[#allocation8 + $0x280] sm:$0xf]  ;;  %v4761_v59 = vld [vmem:[#allocation8 + $0x28c] sm:$0xf0] }
  0xda   :  { %1664 = vmatpush.bf16.msra.mxu2 %v3614_v54  ;;  %v4729_v54 = vld [vmem:[#allocation8 + $0x18c] sm:$0xf0]  ;;  %v1370_v55 = vadd.f32 %v5146_v35, %v1357_v47  ;;  %v4071_v47 = vld [vmem:[#allocation8 + $0x1d0] sm:$0xf0] }
  0xdb   :  { %1651 = vmatpush.bf16.msra.mxu3 %v3486_v52  ;;  %v4037_v52 = vld [vmem:[#allocation8 + $0x180] sm:$0xf]  ;;  %v1423_v56 = vpop.f32.mrf.mxu2 }
  0xdc   :  { %1678 = vmatpush.bf16.msra.mxu0 %v3726_v17  ;;  %v1395_v51 = vpop.f32.mrf.mxu0  ;;  %v1383_v62 = vadd.f32 %v5148_v41, %v1370_v55  ;;  %v4055_v56 = vld [vmem:[#allocation8 + $0x1b0] sm:$0xf0] }
  0xdd   :  { %1640 = vmatpush.bf16.msrb.mxu1 %v3326_v12  ;;  %v3861_v12 = vld [vmem:[#allocation8 + $0x20] sm:$0xf] }
  0xde   :  { %1665 = vmatpush.bf16.msra.mxu2 %v3598_v10  ;;  %v1396_v0 = vadd.f32 %v1395_v51, %v1383_v62  ;;  %v3878_v10 = vor.u32 %v4689_v2, %v3877_v1  ;;  %v3862_v17 = vor.u32 %v4685_v13, %v3861_v12  ;;  %v4699_v51 = vld [vmem:[#allocation8 + $0xa4] sm:$0xf]  ;;  %v4166_v62 = vor.u32 %v4761_v59, %v4165_v29 }
  0xdf   :  { %1652 = vmatpush.bf16.msra.mxu3 %v3470_v8  ;;  %v4723_v13 = vld [vmem:[#allocation8 + $0x164] sm:$0xf] }
  0xe0   :  { %1641 = vmatmul.bf16.vlgmr.msrb.gmra.mxu1 %v5102_v53  ;;  %1679 = vmatpush.bf16.msra.mxu0 %v3710_v9  ;;  %v3926_v53 = vor.u32 %v4701_v43, %v3925_v42  ;;  %v4739_v9 = vld [vmem:[#allocation8 + $0x1e4] sm:$0xf]  ;;  %v3943_v43 = vld [vmem:[#allocation8 + $0xd0] sm:$0xf0] }
  0xe1   :  { %1692 = vmatpush.bf16.msra.mxu1 %v3838_v21  ;;  %v3990_v21 = vor.u32 %v4717_v16, %v3989_v15  ;;  %v4703_v42 = vld [vmem:[#allocation8 + $0xc4] sm:$0xf]  ;;  %v4133_v16 = vld [vmem:[#allocation8 + $0x240] sm:$0xf] }
  0xe2   :  { %1666 = vmatpush.bf16.msra.mxu2 %v3582_v27  ;;  %v4713_v27 = vld [vmem:[#allocation8 + $0x10c] sm:$0xf0]  ;;  %v3946_v20 = vor.u32 %v4703_v42, %v3943_v43  ;;  %v4679_v42 = vld [vmem:[#allocation8 + $0x4] sm:$0xf] }
  0xe3   :  { %1653 = vmatpush.bf16.msra.mxu3 %v3454_v26  ;;  %1680 = vmatmul.bf16.vlgmr.msra.gmra.mxu0 %v5120_v39  ;;  %v4725_v39 = vld [vmem:[#allocation8 + $0x16c] sm:$0xf0]  ;;  %v3973_v26 = vld [vmem:[#allocation8 + $0x100] sm:$0xf] }
  0xe4   :  { %v4022_v3 = vor.u32 %v4725_v39, %v4021_v61  ;;  %v1397_v7 = vpop.f32.mrf.mxu0  ;;  %v3974_v37 = vor.u32 %v4713_v27, %v3973_v26  ;;  %v3911_v61 = vld [vmem:[#allocation8 + $0x90] sm:$0xf0] }
  0xe5   :  { %2497 = vmatpush.bf16.msrb.mxu1 %v4086_v32  ;;  %1667 = vmatmul.bf16.vlgmr.msra.gmra.mxu2 %v5118_v34  ;;  %v4038_v34 = vor.u32 %v4729_v54, %v4037_v52  ;;  %v5163_v35 = vpop.f32.mrf.mxu3  ;;  %v3927_v52 = vld [vmem:[#allocation8 + $0xb0] sm:$0xf0]  ;;  %v4074_v54 = vor.u32 %v4735_v46, %v4071_v47  ;;  %v4745_v46 = vld [vmem:[#allocation8 + $0x20c] sm:$0xf0]  ;;  %v3965_v47 = vld [vmem:[#allocation8 + $0xe8] sm:$0xf] }
  0xe6   :  { %1654 = vmatmul.bf16.vlgmr.msra.gmra.mxu3 %v5106_v60  ;;  %v1408_v60 = vpop.f32.mrf.mxu1  ;;  %v1435_v18 = vadd.f32 %v5163_v35, %v319_v5 }
  0xe7   :  { %2484 = vmatpush.bf16.msrb.mxu3 %v3958_v28  ;;  %v1409_v41 = vadd.f32 %v1408_v60, %v1396_v0  ;;  %v4214_v28 = vor.u32 %v4773_v23, %v4213_v22  ;;  %v4731_v60 = vld [vmem:[#allocation8 + $0x1a4] sm:$0xf]  ;;  %v4039_v0 = vld [vmem:[#allocation8 + $0x190] sm:$0xf0] }
  0xe8   :  { %v5167_v11 = vpop.f32.mrf.mxu2  ;;  %v4058_v39 = vor.u32 %v4731_v60, %v4055_v56  ;;  %v4719_v23 = vld [vmem:[#allocation8 + $0x144] sm:$0xf] }
  0xe9   :  { %2498 = vmatpush.bf16.msrb.mxu1 %v4070_v44  ;;  %v1422_v57 = vadd.f32 %v5155_v38, %v1409_v41  ;;  %2510 = vmatpush.bf16.msrb.mxu2 %v4214_v28  ;;  %v4197_v38 = vld [vmem:[#allocation8 + $0x2c0] sm:$0xf]  ;;  %v4090_v44 = vor.u32 %v4739_v9, %v4087_v30  ;;  %v4749_v9 = vld [vmem:[#allocation8 + $0x22c] sm:$0xf0]  ;;  %v1448_v30 = vadd.f32 %v5167_v11, %v1435_v18  ;;  %v4093_v18 = vld [vmem:[#allocation8 + $0x1e8] sm:$0xf] }
  0xea   :  { %v4117_v28 = vld [vmem:[#allocation8 + $0x220] sm:$0xf] }
  0xeb   :  { %2485 = vmatpush.bf16.msrb.mxu3 %v3942_v40  ;;  %v1698_v33 = vmax.f32 %v1422_v57, 0.0  ;;  %v4769_v40 = vld [vmem:[#allocation8 + $0x2cc] sm:$0xf0]  ;;  %v3879_v57 = vld [vmem:[#allocation8 + $0x50] sm:$0xf0] }
  0xec   :  { %v4198_v45 = vor.u32 %v4769_v40, %v4197_v38  ;;  %v3882_v27 = vor.u32 %v4687_v19, %v3879_v57  ;;  %v3991_v38 = vld [vmem:[#allocation8 + $0x130] sm:$0xf0]  ;;  %v4742_v19 = vld [vmem:[#allocation8 + $0x1f4] sm:$0xf0] }
  0xed   :  { %2499 = vmatpush.bf16.msrb.mxu1 %v4054_v50  ;;  %v1436_v24 = vpop.f32.mrf.mxu3  ;;  %v4765_v50 = vld [vmem:[#allocation8 + $0x2ac] sm:$0xf0] }
  0xee   :  { %v1410_v8 = vpop.f32.mrf.mxu1  ;;  %2511 = vmatpush.bf16.msrb.mxu2 %v4198_v45  ;;  %v4182_v55 = vor.u32 %v4765_v50, %v4181_v49  ;;  %v4007_v24 = vld [vmem:[#allocation8 + $0x150] sm:$0xf0]  ;;  %v4101_v45 = vld [vmem:[#allocation8 + $0x200] sm:$0xf]  ;;  %v4771_v49 = vld [vmem:[#allocation8 + $0x2e4] sm:$0xf] }
  0xef   :  { %2486 = vmatpush.bf16.msrb.mxu3 %v3926_v53  ;;  %v5170_v53 = vpack.c.bf16 %v1698_v33, %v1698_v33  ;;  %v4691_v8 = vld [vmem:[#allocation8 + $0x64] sm:$0xf]  ;;  %v4010_v35 = vor.u32 %v4719_v23, %v4007_v24  ;;  %v4102_v11 = vor.u32 %v4745_v46, %v4101_v45  ;;  %v4215_v50 = vld [vmem:[#allocation8 + $0x2f0] sm:$0xf0]  ;;  %v4698_v23 = vld [vmem:[#allocation8 + $0x94] sm:$0xf0] }
  0xf0   :  { %3842 = vmatmul.msk.bf16.vlgmr.msra.gmra.mxu1 %vm1330_vm0, %v5114_v48  ;;  %v4707_v48 = vld [vmem:[#allocation8 + $0xe4] sm:$0xf]  ;;  %v1449_v32 = vpop.f32.mrf.mxu2  ;;  %v4218_v60 = vor.u32 %v4771_v49, %v4215_v50  ;;  %v4293_v46 = vld [vmem:[#allocation8 + $0x380] sm:$0xf] }
  0xf1   :  { %2500 = vmatpush.bf16.msrb.mxu1 %v4038_v34  ;;  %v3962_v36 = vor.u32 %v4707_v48, %v3959_v25  ;;  %v4695_v34 = vld [vmem:[#allocation8 + $0x84] sm:$0xf]  ;;  %v3863_v32 = vld [vmem:[#allocation8 + $0x30] sm:$0xf0] }
  0xf2   :  { %2512 = vmatpush.bf16.msrb.mxu2 %v4182_v55  ;;  %v3914_v2 = vor.u32 %v4695_v34, %v3911_v61  ;;  %v3975_v55 = vld [vmem:[#allocation8 + $0x110] sm:$0xf0]  ;;  %v3949_v61 = vld [vmem:[#allocation8 + $0xc8] sm:$0xf]  ;;  %v4759_v24 = vld [vmem:[#allocation8 + $0x284] sm:$0xf] }
  0xf3   :  { %2487 = vmatpush.bf16.msrb.mxu3 %v3910_v58  ;;  %v3930_v58 = vor.u32 %v4699_v51, %v3927_v52  ;;  %v4710_v52 = vld [vmem:[#allocation8 + $0xf4] sm:$0xf0] }
  0xf4   :  { %v3966_v34 = vor.u32 %v4710_v52, %v3965_v47  ;;  %v4793_v47 = vld [vmem:[#allocation8 + $0x38c] sm:$0xf0]  ;;  %v3885_v52 = vld [vmem:[#allocation8 + $0x48] sm:$0xf] }
  0xf5   :  { %2501 = vmatpush.bf16.msrb.mxu1 %v4022_v3  ;;  %v4149_v3 = vld [vmem:[#allocation8 + $0x260] sm:$0xf]  ;;  %v4294_v49 = vor.u32 %v4793_v47, %v4293_v46  ;;  %v4803_v46 = vld [vmem:[#allocation8 + $0x3e4] sm:$0xf]  ;;  %v4343_v47 = vld [vmem:[#allocation8 + $0x3f0] sm:$0xf0] }
  0xf6   :  { %2513 = vmatpush.bf16.msrb.mxu2 %v4166_v62  ;;  %v4150_v12 = vor.u32 %v4757_v4, %v4149_v3  ;;  %v4767_v62 = vld [vmem:[#allocation8 + $0x2c4] sm:$0xf]  ;;  %v4805_v3 = vld [vmem:[#allocation8 + $0x3ec] sm:$0xf0] }
  0xf7   :  { %2488 = vmatpush.bf16.msrb.mxu3 %v3894_v63  ;;  %v4727_v63 = vld [vmem:[#allocation8 + $0x184] sm:$0xf] }
  0xf8   :  { %v4042_v41 = vor.u32 %v4727_v63, %v4039_v0  ;;  %v4199_v63 = vld [vmem:[#allocation8 + $0x2d0] sm:$0xf0]  ;;  %v4706_v0 = vld [vmem:[#allocation8 + $0xd4] sm:$0xf0] }
  0xf9   :  { %2502 = vmatpush.bf16.msrb.mxu1 %v4006_v14  ;;  %v4023_v14 = vld [vmem:[#allocation8 + $0x170] sm:$0xf0] }
  0xfa   :  { %2514 = vmatpush.bf16.msrb.mxu2 %v4150_v12  ;;  %v4026_v48 = vor.u32 %v4723_v13, %v4023_v14  ;;  %v4702_v13 = vld [vmem:[#allocation8 + $0xb4] sm:$0xf0] }
  0xfb   :  { %2489 = vmatpush.bf16.msrb.mxu3 %v3878_v10  ;;  %v3895_v10 = vld [vmem:[#allocation8 + $0x70] sm:$0xf0] }
  0xfc   :  { %v1460_v1 = vpop.f32.mrf.mxu0  ;;  %v3898_v15 = vor.u32 %v4691_v8, %v3895_v10  ;;  %v3933_v8 = vld [vmem:[#allocation8 + $0xa8] sm:$0xf]  ;;  %v4763_v10 = vld [vmem:[#allocation8 + $0x2a4] sm:$0xf] }
  0xfd   :  { %2503 = vmatpush.bf16.msrb.mxu1 %v3990_v21  ;;  %v1473_v7 = vpop.f32.mrf.mxu1  ;;  %v1461_v40 = vadd.f32 %v1460_v1, %v1448_v30  ;;  %v4202_v1 = vor.u32 %v4767_v62, %v4199_v63  ;;  %v4077_v30 = vld [vmem:[#allocation8 + $0x1c8] sm:$0xf] }
  0xfe   :  { %v3869_v63 = vld [vmem:[#allocation8 + $0x28] sm:$0xf] }
  0xff   :  { %2490 = vmatpush.bf16.msrb.mxu3 %v3862_v17  ;;  %v4753_v17 = vld [vmem:[#allocation8 + $0x24c] sm:$0xf0]  ;;  %v1474_v56 = vadd.f32 %v1473_v7, %v1461_v40  ;;  %v3950_v7 = vor.u32 %v4706_v0, %v3949_v61  ;;  %v4730_v61 = vld [vmem:[#allocation8 + $0x194] sm:$0xf0]  ;;  %v4747_v0 = vld [vmem:[#allocation8 + $0x224] sm:$0xf] }
 0x100   :  { %v4134_v21 = vor.u32 %v4753_v17, %v4133_v16  ;;  %v4801_v16 = vld [vmem:[#allocation8 + $0x3cc] sm:$0xf0] }
 0x101   :  { %2504 = vmatpush.bf16.msrb.mxu1 %v3974_v37  ;;  %v4715_v37 = vld [vmem:[#allocation8 + $0x124] sm:$0xf] }
 0x102   :  { %2515 = vmatpush.bf16.msrb.mxu2 %v4134_v21 }
 0x103   :  { %2491 = vmatpush.bf16.msrb.mxu3 %v3846_v31  ;;  %v4683_v31 = vld [vmem:[#allocation8 + $0x24] sm:$0xf] }
 0x104   :  { %v1462_v25 = vpop.f32.mrf.mxu0  ;;  %v3866_v43 = vor.u32 %v4683_v31, %v3863_v32  ;;  %v4738_v31 = vld [vmem:[#allocation8 + $0x1d4] sm:$0xf0] }
 0x105   :  { %2549 = vmatpush.bf16.msra.mxu1 %v4090_v44  ;;  %v1486_v22 = vpop.f32.mrf.mxu3  ;;  %v1475_v33 = vpop.f32.mrf.mxu1  ;;  %v3847_v44 = vld [vmem:[#allocation8 + $0x10] sm:$0xf0]  ;;  %v4094_v25 = vor.u32 %v4742_v19, %v4093_v18  ;;  %v4682_v18 = vld [vmem:[#allocation8 + $0x14] sm:$0xf0]  ;;  %v4743_v19 = vld [vmem:[#allocation8 + $0x204] sm:$0xf] }
 0x106   :  { %2492 = vmatmul.bf16.vlgmr.msrb.gmra.mxu3 %v5170_v53  ;;  %v1487_v59 = vadd.f32 %v1486_v22, %v1474_v56  ;;  %v3934_v22 = vor.u32 %v4702_v13, %v3933_v8  ;;  %v4690_v56 = vld [vmem:[#allocation8 + $0x54] sm:$0xf0]  ;;  %v4261_v8 = vld [vmem:[#allocation8 + $0x340] sm:$0xf] }
 0x107   :  { %2536 = vmatpush.bf16.msra.mxu3 %v3962_v36  ;;  %v4118_v36 = vor.u32 %v4749_v9, %v4117_v28  ;;  %v4797_v28 = vld [vmem:[#allocation8 + $0x3ac] sm:$0xf0]  ;;  %v3886_v62 = vor.u32 %v4690_v56, %v3885_v52  ;;  %v3935_v56 = vld [vmem:[#allocation8 + $0xb8] sm:$0xf0] }
 0x108   :  { %v1499_v26 = vpop.f32.mrf.mxu2 }
 0x109   :  { %2550 = vmatpush.bf16.msra.mxu1 %v4074_v54  ;;  %2516 = vmatpush.bf16.msrb.mxu2 %v4118_v36  ;;  %v4711_v54 = vld [vmem:[#allocation8 + $0x104] sm:$0xf]  ;;  %v1500_v5 = vadd.f32 %v1499_v26, %v1487_v59  ;;  %v4167_v26 = vld [vmem:[#allocation8 + $0x290] sm:$0xf0]  ;;  %v3901_v36 = vld [vmem:[#allocation8 + $0x68] sm:$0xf] }
 0x10a   :  { %v4170_v32 = vor.u32 %v4759_v24, %v4167_v26  ;;  %v4789_v59 = vld [vmem:[#allocation8 + $0x36c] sm:$0xf0]  ;;  %v4708_v26 = vld [vmem:[#allocation8 + $0xec] sm:$0xf] }
 0x10b   :  { %2537 = vmatpush.bf16.msra.mxu3 %v3946_v20  ;;  %v3994_v20 = vor.u32 %v4715_v37, %v3991_v38  ;;  %v4755_v37 = vld [vmem:[#allocation8 + $0x264] sm:$0xf]  ;;  %v4151_v38 = vld [vmem:[#allocation8 + $0x270] sm:$0xf0]  ;;  %v4781_v24 = vld [vmem:[#allocation8 + $0x32c] sm:$0xf0] }
 0x10c   :  { %v4154_v45 = vor.u32 %v4755_v37, %v4151_v38 }
 0x10d   :  { %2551 = vmatpush.bf16.msra.mxu1 %v4058_v39  ;;  %v1488_v51 = vpop.f32.mrf.mxu3  ;;  %2517 = vmatpush.bf16.msrb.mxu2 %v4102_v11  ;;  %v3978_v39 = vor.u32 %v4711_v54, %v3975_v55  ;;  %v4734_v11 = vld [vmem:[#allocation8 + $0x1b4] sm:$0xf0]  ;;  %v4751_v54 = vld [vmem:[#allocation8 + $0x244] sm:$0xf]  ;;  %v4135_v55 = vld [vmem:[#allocation8 + $0x250] sm:$0xf0] }
 0x10f   :  { %2538 = vmatpush.bf16.msra.mxu3 %v3930_v58  ;;  %v3850_v58 = vor.u32 %v4679_v42, %v3847_v44  ;;  %v4694_v44 = vld [vmem:[#allocation8 + $0x74] sm:$0xf0] }
 0x110   :  { %v1501_v29 = vpop.f32.mrf.mxu2  ;;  %v3902_v51 = vor.u32 %v4694_v44, %v3901_v36  ;;  %v4704_v36 = vld [vmem:[#allocation8 + $0xcc] sm:$0xf]  ;;  %v3951_v44 = vld [vmem:[#allocation8 + $0xd8] sm:$0xf0] }
 0x111   :  { %2552 = vmatpush.bf16.msra.mxu1 %v4042_v41  ;;  %2562 = vmatpush.bf16.msra.mxu2 %v4218_v60  ;;  %v4183_v41 = vld [vmem:[#allocation8 + $0x2b0] sm:$0xf0]  ;;  %v4277_v29 = vld [vmem:[#allocation8 + $0x360] sm:$0xf]  ;;  %v3954_v52 = vor.u32 %v4704_v36, %v3951_v44  ;;  %v3871_v44 = vld [vmem:[#allocation8 + $0x38] sm:$0xf0] }
 0x112   :  { %v4186_v14 = vor.u32 %v4763_v10, %v4183_v41  ;;  %v4785_v10 = vld [vmem:[#allocation8 + $0x34c] sm:$0xf0]  ;;  %v4029_v41 = vld [vmem:[#allocation8 + $0x168] sm:$0xf] }
 0x113   :  { %2539 = vmatpush.bf16.msra.mxu3 %v3914_v2  ;;  %v4341_v2 = vld [vmem:[#allocation8 + $0x3e0] sm:$0xf]  ;;  %v4262_v13 = vor.u32 %v4785_v10, %v4261_v8  ;;  %v4736_v10 = vld [vmem:[#allocation8 + $0x1cc] sm:$0xf] }
 0x114   :  { %v4342_v4 = vor.u32 %v4805_v3, %v4341_v2 }
 0x115   :  { %2553 = vmatpush.bf16.msra.mxu1 %v4026_v48  ;;  %2563 = vmatpush.bf16.msra.mxu2 %v4202_v1  ;;  %v1512_v12 = vpop.f32.mrf.mxu3  ;;  %v3917_v48 = vld [vmem:[#allocation8 + $0x88] sm:$0xf]  ;;  %v4119_v1 = vld [vmem:[#allocation8 + $0x230] sm:$0xf0] }
 0x116   :  { %2523 = vmatpush.bf16.msrb.mxu0 %v4342_v4  ;;  %v1513_v17 = vadd.f32 %v1512_v12, %v1500_v5  ;;  %v3918_v33 = vor.u32 %v4698_v23, %v3917_v48  ;;  %v4686_v5 = vld [vmem:[#allocation8 + $0x34] sm:$0xf0]  ;;  %v4245_v23 = vld [vmem:[#allocation8 + $0x320] sm:$0xf] }
 0x117   :  { %2540 = vmatpush.bf16.msra.mxu3 %v3898_v15  ;;  %v4325_v15 = vld [vmem:[#allocation8 + $0x3c0] sm:$0xf]  ;;  %v4726_v12 = vld [vmem:[#allocation8 + $0x174] sm:$0xf0] }
 0x118   :  { %v4326_v57 = vor.u32 %v4801_v16, %v4325_v15  ;;  %v1699_v21 = vmax.f32 %v1513_v17, 0.0  ;;  %v3853_v15 = vld [vmem:[#allocation8 + $0x8] sm:$0xf]  ;;  %v3870_v17 = vor.u32 %v4686_v5, %v3869_v63  ;;  %v4030_v48 = vor.u32 %v4726_v12, %v4029_v41  ;;  %v4795_v5 = vld [vmem:[#allocation8 + $0x3a4] sm:$0xf] }
 0x119   :  { %2554 = vmatpush.bf16.msra.mxu1 %v4010_v35  ;;  %2564 = vmatpush.bf16.msra.mxu2 %v4186_v14 }
 0x11a   :  { %2524 = vmatpush.bf16.msrb.mxu0 %v4326_v57  ;;  %v5177_v9 = vpack.c.bf16 %v1699_v21, %v1699_v21  ;;  %v4103_v57 = vld [vmem:[#allocation8 + $0x210] sm:$0xf0]  ;;  %v4013_v21 = vld [vmem:[#allocation8 + $0x148] sm:$0xf] }
 0x11b   :  { %2541 = vmatpush.bf16.msra.mxu3 %v3882_v27  ;;  %v4309_v27 = vld [vmem:[#allocation8 + $0x3a0] sm:$0xf] }
 0x11c   :  { %v4310_v35 = vor.u32 %v4797_v28, %v4309_v27  ;;  %2505 = vmatmul.bf16.vlgmr.msrb.gmra.mxu1 %v5177_v9  ;;  %v5180_v42 = vpop.f32.mrf.mxu0  ;;  %v3967_v27 = vld [vmem:[#allocation8 + $0xf8] sm:$0xf0]  ;;  %v4246_v28 = vor.u32 %v4781_v24, %v4245_v23  ;;  %v4688_v23 = vld [vmem:[#allocation8 + $0x4c] sm:$0xf] }
 0x11d   :  { %2555 = vmatpush.bf16.msra.mxu1 %v3994_v20  ;;  %v1514_v40 = vpop.f32.mrf.mxu3  ;;  %2565 = vmatpush.bf16.msra.mxu2 %v4170_v32  ;;  %v4061_v20 = vld [vmem:[#allocation8 + $0x1a8] sm:$0xf]  ;;  %v5182_v50 = vpop.f32.mrf.mxu1  ;;  %v4718_v32 = vld [vmem:[#allocation8 + $0x134] sm:$0xf0] }
 0x11e   :  { %2525 = vmatpush.bf16.msrb.mxu0 %v4310_v35  ;;  %v4062_v60 = vor.u32 %v4734_v11, %v4061_v20  ;;  %v4229_v40 = vld [vmem:[#allocation8 + $0x300] sm:$0xf]  ;;  %v320_v20 = vperm.slane %v5150_v6, 2 }
 0x11f   :  { %2542 = vmatpush.bf16.msra.mxu3 %v3866_v43  ;;  %v4078_v43 = vor.u32 %v4738_v31, %v4077_v30  ;;  %v3854_v30 = vor.u32 %v4682_v18, %v3853_v15  ;;  %v3997_v31 = vld [vmem:[#allocation8 + $0x128] sm:$0xf]  ;;  %v4692_v15 = vld [vmem:[#allocation8 + $0x6c] sm:$0xf]  ;;  %v4791_v18 = vld [vmem:[#allocation8 + $0x384] sm:$0xf] }
 0x121   :  { %2556 = vmatpush.bf16.msra.mxu1 %v3978_v39  ;;  %2566 = vmatpush.bf16.msra.mxu2 %v4154_v45  ;;  %v4278_v39 = vor.u32 %v4789_v59, %v4277_v29  ;;  %v4327_v29 = vld [vmem:[#allocation8 + $0x3d0] sm:$0xf0]  ;;  %v1526_v59 = vadd.f32 %v5182_v50, %v320_v20  ;;  %v4079_v50 = vld [vmem:[#allocation8 + $0x1d8] sm:$0xf0]  ;;  %v4724_v20 = vld [vmem:[#allocation8 + $0x16c] sm:$0xf] }
 0x122   :  { %2526 = vmatpush.bf16.msrb.mxu0 %v4294_v49  ;;  %v4346_v49 = vor.u32 %v4803_v46, %v4343_v47  ;;  %v4263_v46 = vld [vmem:[#allocation8 + $0x350] sm:$0xf0] }
 0x123   :  { %2543 = vmatpush.bf16.msra.mxu3 %v3850_v58  ;;  %v4138_v58 = vor.u32 %v4751_v54, %v4135_v55  ;;  %v3981_v54 = vld [vmem:[#allocation8 + $0x108] sm:$0xf]  ;;  %v4714_v55 = vld [vmem:[#allocation8 + $0x114] sm:$0xf0] }
 0x124   :  { %v1553_v3 = vpop.f32.mrf.mxu0 }
 0x125   :  { %2601 = vmatpush.bf16.msrb.mxu1 %v4094_v25  ;;  %2567 = vmatpush.bf16.msra.mxu2 %v4138_v58  ;;  %v1527_v16 = vpop.f32.mrf.mxu1  ;;  %v4722_v25 = vld [vmem:[#allocation8 + $0x154] sm:$0xf0]  ;;  %v4799_v58 = vld [vmem:[#allocation8 + $0x3c4] sm:$0xf] }
 0x126   :  { %2544 = vmatmul.bf16.vlgmr.msra.gmra.mxu3 %v5170_v53  ;;  %2527 = vmatpush.bf16.msrb.mxu0 %v4278_v39  ;;  %v4014_v35 = vor.u32 %v4722_v25, %v4013_v21  ;;  %v4330_v39 = vor.u32 %v4799_v58, %v4327_v29  ;;  %v4082_v16 = vor.u32 %v4736_v10, %v4079_v50  ;;  %v4063_v21 = vld [vmem:[#allocation8 + $0x1b8] sm:$0xf0]  ;;  %v4779_v29 = vld [vmem:[#allocation8 + $0x324] sm:$0xf]  ;;  %v4231_v10 = vld [vmem:[#allocation8 + $0x310] sm:$0xf0] }
 0x127   :  { %2588 = vmatpush.bf16.msrb.mxu3 %v3966_v34  ;;  %v4045_v34 = vld [vmem:[#allocation8 + $0x188] sm:$0xf]  ;;  %v3887_v25 = vld [vmem:[#allocation8 + $0x58] sm:$0xf0]  ;;  %v4716_v50 = vld [vmem:[#allocation8 + $0x12c] sm:$0xf] }
 0x128   :  { %v4046_v4 = vor.u32 %v4730_v61, %v4045_v34  ;;  %v5186_v14 = vpop.f32.mrf.mxu2  ;;  %v4740_v34 = vld [vmem:[#allocation8 + $0x1ec] sm:$0xf]  ;;  %v4095_v61 = vld [vmem:[#allocation8 + $0x1f8] sm:$0xf0] }
 0x129   :  { %2602 = vmatpush.bf16.msrb.mxu1 %v4078_v43  ;;  %v5184_v2 = vpop.f32.mrf.mxu3  ;;  %v4777_v43 = vld [vmem:[#allocation8 + $0x30c] sm:$0xf0]  ;;  %v4098_v3 = vor.u32 %v4740_v34, %v4095_v61  ;;  %v3855_v58 = vld [vmem:[#allocation8 + $0x18] sm:$0xf0]  ;;  %v4720_v61 = vld [vmem:[#allocation8 + $0x14c] sm:$0xf] }
 0x12a   :  { %2528 = vmatpush.bf16.msrb.mxu0 %v4262_v13  ;;  %v4230_v45 = vor.u32 %v4777_v43, %v4229_v40  ;;  %v1539_v8 = vadd.f32 %v5184_v2, %v1526_v59  ;;  %v4247_v59 = vld [vmem:[#allocation8 + $0x330] sm:$0xf0] }
 0x12b   :  { %2589 = vmatpush.bf16.msrb.mxu3 %v3950_v7  ;;  %v4122_v7 = vor.u32 %v4747_v0, %v4119_v1  ;;  %v4696_v0 = vld [vmem:[#allocation8 + $0x8c] sm:$0xf] }
 0x12c   :  { %2557 = vmatmul.bf16.vlgmr.msra.gmra.mxu1 %v5177_v9  ;;  %v5189_v38 = vpop.f32.mrf.mxu0 }
 0x12d   :  { %2603 = vmatpush.bf16.msrb.mxu1 %v4062_v60  ;;  %2568 = vmatpush.bf16.msra.mxu2 %v4122_v7  ;;  %v4700_v60 = vld [vmem:[#allocation8 + $0xac] sm:$0xf]  ;;  %v4311_v7 = vld [vmem:[#allocation8 + $0x3b0] sm:$0xf0] }
 0x12e   :  { %2529 = vmatpush.bf16.msrb.mxu0 %v4246_v28  ;;  %v3938_v63 = vor.u32 %v4700_v60, %v3935_v56  ;;  %v4314_v41 = vor.u32 %v4795_v5, %v4311_v7  ;;  %v4680_v60 = vld [vmem:[#allocation8 + $0xc] sm:$0xf] }
 0x12f   :  { %2590 = vmatpush.bf16.msrb.mxu3 %v3934_v22  ;;  %v4106_v22 = vor.u32 %v4743_v19, %v4103_v57  ;;  %v4295_v19 = vld [vmem:[#allocation8 + $0x390] sm:$0xf0]  ;;  %v1552_v57 = vadd.f32 %v5180_v42, %v1539_v8  ;;  %v4775_v8 = vld [vmem:[#allocation8 + $0x304] sm:$0xf] }
 0x130   :  { %v1566_v11 = vpop.f32.mrf.mxu2  ;;  %v4298_v2 = vor.u32 %v4791_v18, %v4295_v19  ;;  %v4712_v19 = vld [vmem:[#allocation8 + $0x10c] sm:$0xf] }
 0x131   :  { %2604 = vmatpush.bf16.msrb.mxu1 %v4046_v4  ;;  %v1540_v37 = vpop.f32.mrf.mxu3  ;;  %2569 = vmatpush.bf16.msra.mxu2 %v4106_v22  ;;  %v3919_v4 = vld [vmem:[#allocation8 + $0x98] sm:$0xf0]  ;;  %v1565_v28 = vadd.f32 %v5186_v14, %v1552_v57 }
 0x132   :  { %2530 = vmatpush.bf16.msrb.mxu0 %v4230_v45  ;;  %v3922_v13 = vor.u32 %v4696_v0, %v3919_v4  ;;  %v4684_v37 = vld [vmem:[#allocation8 + $0x2c] sm:$0xf]  ;;  %v4783_v45 = vld [vmem:[#allocation8 + $0x344] sm:$0xf]  ;;  %v4031_v14 = vld [vmem:[#allocation8 + $0x178] sm:$0xf0] }
 0x133   :  { %2591 = vmatpush.bf16.msrb.mxu3 %v3918_v33  ;;  %v3970_v33 = vor.u32 %v4708_v26, %v3967_v27  ;;  %v4787_v26 = vld [vmem:[#allocation8 + $0x364] sm:$0xf]  ;;  %v4279_v27 = vld [vmem:[#allocation8 + $0x370] sm:$0xf0]  ;;  %v4034_v56 = vor.u32 %v4724_v20, %v4031_v14  ;;  %v4770_v4 = vld [vmem:[#allocation8 + $0x2d4] sm:$0xf0] }
 0x134   :  { %v1605_v1 = vpop.f32.mrf.mxu0  ;;  %v4282_v42 = vor.u32 %v4787_v26, %v4279_v27  ;;  %v3983_v57 = vld [vmem:[#allocation8 + $0x118] sm:$0xf0]  ;;  %v4758_v26 = vld [vmem:[#allocation8 + $0x274] sm:$0xf0]  ;;  %v4772_v14 = vld [vmem:[#allocation8 + $0x2ec] sm:$0xf] }
 0x135   :  { %2605 = vmatpush.bf16.msrb.mxu1 %v4030_v48  ;;  %v4732_v48 = vld [vmem:[#allocation8 + $0x1ac] sm:$0xf] }
 0x136   :  { %2575 = vmatpush.bf16.msra.mxu0 %v4346_v49  ;;  %v4066_v24 = vor.u32 %v4732_v48, %v4063_v21  ;;  %v4266_v49 = vor.u32 %v4783_v45, %v4263_v46  ;;  %v4173_v21 = vld [vmem:[#allocation8 + $0x288] sm:$0xf] }
 0x137   :  { %2592 = vmatpush.bf16.msrb.mxu3 %v3902_v51  ;;  %v3998_v51 = vor.u32 %v4718_v32, %v3997_v31  ;;  %v4047_v31 = vld [vmem:[#allocation8 + $0x198] sm:$0xf0] }
 0x139   :  { %2606 = vmatpush.bf16.msrb.mxu1 %v4014_v35 }
 0x13a   :  { %2576 = vmatpush.bf16.msra.mxu0 %v4330_v39  ;;  %v4015_v39 = vld [vmem:[#allocation8 + $0x158] sm:$0xf0] }
 0x13b   :  { %2593 = vmatpush.bf16.msrb.mxu3 %v3886_v62  ;;  %v3982_v62 = vor.u32 %v4714_v55, %v3981_v54  ;;  %v4221_v54 = vld [vmem:[#allocation8 + $0x2e8] sm:$0xf]  ;;  %v4774_v55 = vld [vmem:[#allocation8 + $0x2f4] sm:$0xf0]  ;;  %v4018_v5 = vor.u32 %v4720_v61, %v4015_v39 }
 0x13c   :  { %v4222_v0 = vor.u32 %v4774_v55, %v4221_v54  ;;  %v4768_v55 = vld [vmem:[#allocation8 + $0x2cc] sm:$0xf] }
 0x13d   :  { %2607 = vmatpush.bf16.msrb.mxu1 %v3998_v51  ;;  %v1577_v12 = vpop.f32.mrf.mxu1 }
 0x13e   :  { %2577 = vmatpush.bf16.msra.mxu0 %v4314_v41  ;;  %v1578_v35 = vadd.f32 %v1577_v12, %v1565_v28  ;;  %v3999_v41 = vld [vmem:[#allocation8 + $0x138] sm:$0xf0] }
 0x13f   :  { %2594 = vmatpush.bf16.msrb.mxu3 %v3870_v17  ;;  %v3903_v17 = vld [vmem:[#allocation8 + $0x78] sm:$0xf0]  ;;  %v4002_v18 = vor.u32 %v4716_v50, %v3999_v41  ;;  %v4317_v41 = vld [vmem:[#allocation8 + $0x3a8] sm:$0xf] }
 0x140   :  { %v3906_v22 = vor.u32 %v4692_v15, %v3903_v17  ;;  %v5198_v32 = vpop.f32.mrf.mxu0  ;;  %v4766_v17 = vld [vmem:[#allocation8 + $0x2b4] sm:$0xf0]  ;;  %v4175_v50 = vld [vmem:[#allocation8 + $0x298] sm:$0xf0] }
 0x141   :  { %2608 = vmatpush.bf16.msrb.mxu1 %v3982_v62 }
 0x142   :  { %2578 = vmatpush.bf16.msra.mxu0 %v4298_v2  ;;  %v4762_v2 = vld [vmem:[#allocation8 + $0x294] sm:$0xf0] }
 0x143   :  { %2595 = vmatpush.bf16.msrb.mxu3 %v3854_v30  ;;  %v4728_v30 = vld [vmem:[#allocation8 + $0x18c] sm:$0xf] }
 0x144   :  { %2609 = vmatmul.bf16.vlgmr.msrb.gmra.mxu1 %v5177_v9  ;;  %v4050_v43 = vor.u32 %v4728_v30, %v4047_v31  ;;  %v4141_v31 = vld [vmem:[#allocation8 + $0x248] sm:$0xf] }
 0x145   :  { %2653 = vmatpush.bf16.msra.mxu1 %v4098_v3  ;;  %v1579_v36 = vpop.f32.mrf.mxu1  ;;  %v4205_v3 = vld [vmem:[#allocation8 + $0x2c8] sm:$0xf] }
 0x146   :  { %2596 = vmatmul.bf16.vlgmr.msrb.gmra.mxu3 %v5170_v53  ;;  %2579 = vmatpush.bf16.msra.mxu0 %v4282_v42  ;;  %v4206_v15 = vor.u32 %v4770_v4, %v4205_v3  ;;  %v4750_v36 = vld [vmem:[#allocation8 + $0x234] sm:$0xf0]  ;;  %v4333_v3 = vld [vmem:[#allocation8 + $0x3c8] sm:$0xf] }
 0x147   :  { %2640 = vmatpush.bf16.msra.mxu3 %v3970_v33  ;;  %v3890_v33 = vor.u32 %v4688_v23, %v3887_v25  ;;  %v3986_v23 = vor.u32 %v4712_v19, %v3983_v57  ;;  %v4157_v25 = vld [vmem:[#allocation8 + $0x268] sm:$0xf]  ;;  %v4802_v4 = vld [vmem:[#allocation8 + $0x3d4] sm:$0xf0] }
 0x148   :  { %v1616_v11 = vpop.f32.mrf.mxu2  ;;  %v1631_v62 = vpop.f32.mrf.mxu0  ;;  %v4158_v30 = vor.u32 %v4758_v26, %v4157_v25  ;;  %v4794_v19 = vld [vmem:[#allocation8 + $0x394] sm:$0xf0]  ;;  %v4748_v26 = vld [vmem:[#allocation8 + $0x22c] sm:$0xf] }
 0x149   :  { %2654 = vmatpush.bf16.msra.mxu1 %v4082_v16  ;;  %v1590_v40 = vpop.f32.mrf.mxu3  ;;  %v4189_v16 = vld [vmem:[#allocation8 + $0x2a8] sm:$0xf] }
 0x14a   :  { %v1591_v47 = vadd.f32 %v1590_v40, %v1578_v35  ;;  %2580 = vmatpush.bf16.msra.mxu0 %v4266_v49  ;;  %v4190_v48 = vor.u32 %v4766_v17, %v4189_v16  ;;  %v4756_v16 = vld [vmem:[#allocation8 + $0x26c] sm:$0xf]  ;;  %v4159_v17 = vld [vmem:[#allocation8 + $0x278] sm:$0xf0] }
 0x14b   :  { %2641 = vmatpush.bf16.msra.mxu3 %v3954_v52  ;;  %v3874_v52 = vor.u32 %v4684_v37, %v3871_v44  ;;  %v4162_v57 = vor.u32 %v4756_v16, %v4159_v17 }
 0x14c   :  { %v1604_v51 = vadd.f32 %v5189_v38, %v1591_v47  ;;  %v3858_v38 = vor.u32 %v4680_v60, %v3855_v58  ;;  %v4109_v47 = vld [vmem:[#allocation8 + $0x208] sm:$0xf]  ;;  %v4207_v60 = vld [vmem:[#allocation8 + $0x2d8] sm:$0xf0] }
 0x14d   :  { %2655 = vmatpush.bf16.msra.mxu1 %v4066_v24  ;;  %v4174_v24 = vor.u32 %v4762_v2, %v4173_v21  ;;  %v4210_v39 = vor.u32 %v4768_v55, %v4207_v60  ;;  %v4752_v21 = vld [vmem:[#allocation8 + $0x24c] sm:$0xf]  ;;  %v4143_v2 = vld [vmem:[#allocation8 + $0x258] sm:$0xf0]  ;;  %v5216_v60 = vld [vmem:[#allocation10] sm:$0xf] }
 0x14e   :  { %v1700_v34 = vmax.f32 %v1604_v51, 0.0  ;;  %v4303_v55 = vld [vmem:[#allocation8 + $0x398] sm:$0xf0] }
 0x14f   :  { %2642 = vmatpush.bf16.msra.mxu3 %v3938_v63  ;;  %v4250_v63 = vor.u32 %v4779_v29, %v4247_v59  ;;  %v4349_v29 = vld [vmem:[#allocation8 + $0x3e8] sm:$0xf]  ;;  %v4806_v59 = vld [vmem:[#allocation8 + $0x3f4] sm:$0xf0] }
 0x150   :  { %v5201_v1 = vpack.c.bf16 %v1700_v34, %v1700_v34  ;;  %v1618_v12 = vpop.f32.mrf.mxu2  ;;  %v4350_v62 = vor.u32 %v4806_v59, %v4349_v29  ;;  %v4287_v29 = vld [vmem:[#allocation8 + $0x378] sm:$0xf0] }
 0x151   :  { %2656 = vmatpush.bf16.msra.mxu1 %v4050_v43  ;;  %v1592_v7 = vpop.f32.mrf.mxu3  ;;  %2581 = vmatpush.bf16.msra.mxu0 %v4250_v63  ;;  %v4764_v63 = vld [vmem:[#allocation8 + $0x2ac] sm:$0xf]  ;;  %v4798_v12 = vld [vmem:[#allocation8 + $0x3b4] sm:$0xf0] }
 0x152   :  { %2518 = vmatmul.bf16.vlgmr.msrb.gmra.mxu2 %v5201_v1 }
 0x153   :  { %2643 = vmatpush.bf16.msra.mxu3 %v3922_v13  ;;  %v4234_v13 = vor.u32 %v4775_v8, %v4231_v10  ;;  %2614 = vmatpush.bf16.msrb.mxu2 %v4222_v0  ;;  %v4191_v0 = vld [vmem:[#allocation8 + $0x2b8] sm:$0xf0]  ;;  %v4334_v8 = vor.u32 %v4802_v4, %v4333_v3  ;;  %v4760_v10 = vld [vmem:[#allocation8 + $0x28c] sm:$0xf] }
 0x154   :  { %v4780_v4 = vld [vmem:[#allocation8 + $0x32c] sm:$0xf] }
 0x155   :  { %2657 = vmatpush.bf16.msra.mxu1 %v4034_v56  ;;  %2582 = vmatpush.bf16.msra.mxu0 %v4234_v13  ;;  %v4178_v13 = vor.u32 %v4760_v10, %v4175_v50  ;;  %v4239_v10 = vld [vmem:[#allocation8 + $0x318] sm:$0xf0] }
 0x157   :  { %2644 = vmatpush.bf16.msra.mxu3 %v3906_v22  ;;  %2615 = vmatpush.bf16.msrb.mxu2 %v4206_v15  ;;  %v321_v22 = vperm.slane %v5150_v6, 3  ;;  %v4318_v15 = vor.u32 %v4798_v12, %v4317_v41 }
 0x159   :  { %2658 = vmatpush.bf16.msra.mxu1 %v4018_v5  ;;  %v1617_v27 = vadd.f32 %v1616_v11, %v321_v22  ;;  %v4223_v11 = vld [vmem:[#allocation8 + $0x2f8] sm:$0xf0]  ;;  %v4194_v5 = vor.u32 %v4764_v63, %v4191_v0  ;;  %v4285_v22 = vld [vmem:[#allocation8 + $0x368] sm:$0xf] }
 0x15b   :  { %2645 = vmatpush.bf16.msra.mxu3 %v3890_v33  ;;  %2616 = vmatpush.bf16.msrb.mxu2 %v4190_v48  ;;  %v1630_v42 = vadd.f32 %v5198_v32, %v1617_v27  ;;  %v4125_v33 = vld [vmem:[#allocation8 + $0x228] sm:$0xf]  ;;  %v4127_v27 = vld [vmem:[#allocation8 + $0x238] sm:$0xf0] }
 0x15c   :  { %v4126_v46 = vor.u32 %v4750_v36, %v4125_v33  ;;  %v4253_v33 = vld [vmem:[#allocation8 + $0x328] sm:$0xf]  ;;  %v4782_v36 = vld [vmem:[#allocation8 + $0x334] sm:$0xf0] }
 0x15d   :  { %2659 = vmatpush.bf16.msra.mxu1 %v4002_v18  ;;  %v1642_v28 = vpop.f32.mrf.mxu1  ;;  %v4301_v18 = vld [vmem:[#allocation8 + $0x388] sm:$0xf] }
 0x15e   :  { %v1643_v37 = vadd.f32 %v1642_v28, %v1630_v42  ;;  %v4302_v48 = vor.u32 %v4794_v19, %v4301_v18  ;;  %v4269_v28 = vld [vmem:[#allocation8 + $0x348] sm:$0xf]  ;;  %v4814_v18 = vld [vmem:[#allocation11 + $0x38] sm:$0xff] }
 0x15f   :  { %2646 = vmatpush.bf16.msra.mxu3 %v3874_v52  ;;  %2617 = vmatpush.bf16.msrb.mxu2 %v4174_v24  ;;  %v4226_v52 = vor.u32 %v4772_v14, %v4223_v11  ;;  %v4146_v24 = vor.u32 %v4752_v21, %v4143_v2  ;;  %v4800_v14 = vld [vmem:[#allocation8 + $0x3cc] sm:$0xf]  ;;  %v4335_v11 = vld [vmem:[#allocation8 + $0x3d8] sm:$0xf0] }
 0x160   :  { %v1681_v6 = vpop.f32.mrf.mxu0 }
 0x161   :  { %2660 = vmatpush.bf16.msra.mxu1 %v3986_v23  ;;  %v4790_v23 = vld [vmem:[#allocation8 + $0x374] sm:$0xf0] }
 0x162   :  { %2570 = vmatmul.bf16.vlgmr.msra.gmra.mxu2 %v5201_v1  ;;  %v4286_v25 = vor.u32 %v4790_v23, %v4285_v22  ;;  %v4812_v22 = vld [vmem:[#allocation11 + $0x28] sm:$0xff] }
 0x163   :  { %2647 = vmatpush.bf16.msra.mxu3 %v3858_v38  ;;  %2618 = vmatpush.bf16.msrb.mxu2 %v4158_v30  ;;  %v4786_v30 = vld [vmem:[#allocation8 + $0x354] sm:$0xf0] }
 0x164   :  { %2661 = vmatmul.bf16.vlgmr.msra.gmra.mxu1 %v5177_v9  ;;  %v4746_v9 = vld [vmem:[#allocation8 + $0x214] sm:$0xf0]  ;;  %v4270_v42 = vor.u32 %v4786_v30, %v4269_v28  ;;  %v4822_v28 = vld [vmem:[#allocation11 + $0x78] sm:$0xff] }
 0x165   :  { %v1644_v40 = vpop.f32.mrf.mxu1  ;;  %v4110_v51 = vor.u32 %v4746_v9, %v4109_v47  ;;  %v4351_v47 = vld [vmem:[#allocation8 + $0x3f8] sm:$0xf0]  ;;  %2973 = vmatpush.bf16.msrb.mxu1 %v4822_v28  ;;  %v4809_v30 = vld [vmem:[#allocation11 + $0x10] sm:$0xff] }
 0x166   :  { %2648 = vmatmul.bf16.vlgmr.msra.gmra.mxu3 %v5170_v53  ;;  %v4754_v53 = vld [vmem:[#allocation8 + $0x254] sm:$0xf0]  ;;  %v4254_v40 = vor.u32 %v4782_v36, %v4253_v33  ;;  %v1839_v36 = vperm.slane %v5216_v60, 3 }
 0x167   :  { %v4142_v35 = vor.u32 %v4754_v53, %v4141_v31  ;;  %v4130_v53 = vor.u32 %v4748_v26, %v4127_v27  ;;  %2960 = vmatpush.bf16.msrb.mxu3 %v4814_v18  ;;  %v4810_v27 = vld [vmem:[#allocation11 + $0x18] sm:$0xff]  ;;  %v4832_v18 = vld [vmem:[#allocation11 + $0xc8] sm:$0xff] }
 0x168   :  { %v1668_v45 = vpop.f32.mrf.mxu2  ;;  %v1683_v32 = vpop.f32.mrf.mxu0 }
 0x169   :  { %v1655_v43 = vpop.f32.mrf.mxu3  ;;  %2619 = vmatpush.bf16.msrb.mxu2 %v4142_v35  ;;  %v4111_v35 = vld [vmem:[#allocation8 + $0x218] sm:$0xf0]  ;;  %v4338_v32 = vor.u32 %v4800_v14, %v4335_v11  ;;  %v4816_v14 = vld [vmem:[#allocation11 + $0x48] sm:$0xff] }
 0x16a   :  { %v1656_v44 = vadd.f32 %v1655_v43, %v1643_v37  ;;  %v4237_v43 = vld [vmem:[#allocation8 + $0x308] sm:$0xf]  ;;  %v4828_v11 = vld [vmem:[#allocation11 + $0xa8] sm:$0xff] }
 0x16c   :  { %v1669_v20 = vadd.f32 %v1668_v45, %v1656_v44  ;;  %v4778_v44 = vld [vmem:[#allocation8 + $0x314] sm:$0xf0] }
 0x16d   :  { %2620 = vmatpush.bf16.msrb.mxu2 %v4126_v46  ;;  %v1694_v54 = vpop.f32.mrf.mxu1  ;;  %v4804_v46 = vld [vmem:[#allocation8 + $0x3ec] sm:$0xf]  ;;  %v4238_v9 = vor.u32 %v4778_v44, %v4237_v43 }
 0x16e   :  { %v1682_v49 = vadd.f32 %v1681_v6, %v1669_v20  ;;  %v4744_v6 = vld [vmem:[#allocation8 + $0x20c] sm:$0xf]  ;;  %v4354_v20 = vor.u32 %v4804_v46, %v4351_v47  ;;  %v4829_v46 = vld [vmem:[#allocation11 + $0xb0] sm:$0xff] }
 0x16f   :  { %v4114_v37 = vor.u32 %v4744_v6, %v4111_v35  ;;  %v4807_v6 = vld [vmem:[#allocation11] sm:$0xff] }
 0x170   :  { %v1695_v56 = vadd.f32 %v1694_v54, %v1682_v49  ;;  %v1670_v34 = vpop.f32.mrf.mxu2  ;;  %v4796_v49 = vld [vmem:[#allocation8 + $0x3ac] sm:$0xf]  ;;  %v4819_v35 = vld [vmem:[#allocation11 + $0x60] sm:$0xff] }
 0x171   :  { %v1657_v58 = vpop.f32.mrf.mxu3  ;;  %2621 = vmatpush.bf16.msrb.mxu2 %v4110_v51  ;;  %v4319_v51 = vld [vmem:[#allocation8 + $0x3b8] sm:$0xf0]  ;;  %v4792_v54 = vld [vmem:[#allocation8 + $0x38c] sm:$0xf] }
 0x172   :  { %v1701_v61 = vmax.f32 %v1695_v56, 0.0  ;;  %v4306_v56 = vor.u32 %v4792_v54, %v4303_v55  ;;  %v1836_v58 = vperm.slane %v5216_v60, 0  ;;  %v4826_v55 = vld [vmem:[#allocation11 + $0x98] sm:$0xff] }
 0x174   :  { %v5209_v38 = vpack.c.bf16 %v1701_v61, %v1701_v61  ;;  %2622 = vmatmul.bf16.vlgmr.msrb.gmra.mxu2 %v5201_v1  ;;  %v4784_v61 = vld [vmem:[#allocation8 + $0x34c] sm:$0xf] }
 0x175   :  { %2666 = vmatpush.bf16.msra.mxu2 %v4226_v52  ;;  %v1696_v7 = vpop.f32.mrf.mxu1  ;;  %v4322_v52 = vor.u32 %v4796_v49, %v4319_v51  ;;  %v4815_v49 = vld [vmem:[#allocation11 + $0x40] sm:$0xff] }
 0x176   :  { %2531 = vmatmul.bf16.vlgmr.msrb.gmra.mxu0 %v5209_v38  ;;  %v4827_v51 = vld [vmem:[#allocation11 + $0xa0] sm:$0xff] }
 0x177   :  { %2627 = vmatpush.bf16.msrb.mxu0 %v4350_v62 }
 0x179   :  { %2667 = vmatpush.bf16.msra.mxu2 %v4210_v39  ;;  %v4271_v39 = vld [vmem:[#allocation8 + $0x358] sm:$0xf0] }
 0x17a   :  { %v4274_v3 = vor.u32 %v4784_v61, %v4271_v39  ;;  %v4823_v61 = vld [vmem:[#allocation11 + $0x80] sm:$0xff]  ;;  %v4838_v39 = vld [vmem:[#allocation11 + $0xf8] sm:$0xff] }
 0x17b   :  { %2628 = vmatpush.bf16.msrb.mxu0 %v4334_v8  ;;  %v4776_v8 = vld [vmem:[#allocation8 + $0x30c] sm:$0xf] }
 0x17c   :  { %v4242_v12 = vor.u32 %v4776_v8, %v4239_v10  ;;  %v4835_v8 = vld [vmem:[#allocation11 + $0xe0] sm:$0xff] }
 0x17d   :  { %2668 = vmatpush.bf16.msra.mxu2 %v4194_v5  ;;  %v4255_v5 = vld [vmem:[#allocation8 + $0x338] sm:$0xf0] }
 0x17e   :  { %v4258_v7 = vor.u32 %v4780_v4, %v4255_v5  ;;  %v4836_v5 = vld [vmem:[#allocation11 + $0xe8] sm:$0xff] }
 0x17f   :  { %2629 = vmatpush.bf16.msrb.mxu0 %v4318_v15 }
 0x181   :  { %2669 = vmatpush.bf16.msra.mxu2 %v4178_v13  ;;  %v1837_v13 = vperm.slane %v5216_v60, 1 }
 0x183   :  { %2630 = vmatpush.bf16.msrb.mxu0 %v4302_v48  ;;  %v4813_v48 = vld [vmem:[#allocation11 + $0x30] sm:$0xff] }
 0x184   :  { %2961 = vmatpush.bf16.msrb.mxu3 %v4813_v48 }
 0x185   :  { %2670 = vmatpush.bf16.msra.mxu2 %v4162_v57  ;;  %v1838_v57 = vperm.slane %v5216_v60, 2  ;;  %v4825_v60 = vld [vmem:[#allocation11 + $0x90] sm:$0xff] }
 0x186   :  { %2583 = vmatmul.bf16.vlgmr.msra.gmra.mxu0 %v5209_v38 }
 0x187   :  { %2631 = vmatpush.bf16.msrb.mxu0 %v4286_v25  ;;  %v4811_v25 = vld [vmem:[#allocation11 + $0x20] sm:$0xff] }
 0x188   :  { %2962 = vmatpush.bf16.msrb.mxu3 %v4812_v22 }
 0x189   :  { %v2493_v31 = vpop.f32.mrf.mxu3  ;;  %2671 = vmatpush.bf16.msra.mxu2 %v4146_v24 }
 0x18a   :  { %v2494_v34 = vadd.f32 %v2493_v31, %v1836_v58  ;;  %v4821_v31 = vld [vmem:[#allocation11 + $0x70] sm:$0xff] }
 0x18b   :  { %2632 = vmatpush.bf16.msrb.mxu0 %v4270_v42  ;;  %2974 = vmatpush.bf16.msrb.mxu1 %v4821_v31  ;;  %v4820_v42 = vld [vmem:[#allocation11 + $0x68] sm:$0xff] }
 0x18c   :  { %2963 = vmatpush.bf16.msrb.mxu3 %v4811_v25 }
 0x18d   :  { %2672 = vmatpush.bf16.msra.mxu2 %v4130_v53  ;;  %v4808_v53 = vld [vmem:[#allocation11 + $0x8] sm:$0xff] }
 0x18f   :  { %2633 = vmatpush.bf16.msrb.mxu0 %v4254_v40  ;;  %2975 = vmatpush.bf16.msrb.mxu1 %v4820_v42  ;;  %v4830_v40 = vld [vmem:[#allocation11 + $0xb8] sm:$0xff] }
 0x190   :  { %2964 = vmatpush.bf16.msrb.mxu3 %v4810_v27 }
 0x191   :  { %v2495_v45 = vpop.f32.mrf.mxu3  ;;  %2673 = vmatpush.bf16.msra.mxu2 %v4114_v37  ;;  %v4818_v37 = vld [vmem:[#allocation11 + $0x58] sm:$0xff] }
 0x192   :  { %v4817_v45 = vld [vmem:[#allocation11 + $0x50] sm:$0xff] }
 0x193   :  { %2634 = vmatpush.bf16.msrb.mxu0 %v4238_v9  ;;  %2976 = vmatpush.bf16.msrb.mxu1 %v4819_v35 }
 0x194   :  { %2674 = vmatmul.bf16.vlgmr.msra.gmra.mxu2 %v5201_v1  ;;  %v4788_v1 = vld [vmem:[#allocation8 + $0x36c] sm:$0xf]  ;;  %2965 = vmatpush.bf16.msrb.mxu3 %v4809_v30 }
 0x195   :  { %v4290_v59 = vor.u32 %v4788_v1, %v4287_v29  ;;  %2986 = vmatpush.bf16.msrb.mxu2 %v4830_v40  ;;  %v4824_v1 = vld [vmem:[#allocation11 + $0x88] sm:$0xff] }
 0x196   :  { %2635 = vmatmul.bf16.vlgmr.msrb.gmra.mxu0 %v5209_v38 }
 0x197   :  { %2679 = vmatpush.bf16.msra.mxu0 %v4354_v20  ;;  %2977 = vmatpush.bf16.msrb.mxu1 %v4818_v37 }
 0x198   :  { %2966 = vmatpush.bf16.msrb.mxu3 %v4808_v53 }
 0x199   :  { %v2506_v62 = vpop.f32.mrf.mxu1  ;;  %2987 = vmatpush.bf16.msrb.mxu2 %v4829_v46 }
 0x19a   :  { %v5219_v0 = vadd.f32 %v2506_v62, %v2494_v34 }
 0x19b   :  { %2680 = vmatpush.bf16.msra.mxu0 %v4338_v32  ;;  %2978 = vmatpush.bf16.msrb.mxu1 %v4817_v45 }
 0x19c   :  { %2967 = vmatpush.bf16.msrb.mxu3 %v4807_v6 }
 0x19d   :  { %2988 = vmatpush.bf16.msrb.mxu2 %v4828_v11 }
 0x19f   :  { %2681 = vmatpush.bf16.msra.mxu0 %v4322_v52  ;;  %2979 = vmatpush.bf16.msrb.mxu1 %v4816_v14 }
 0x1a1   :  { %v2508_v50 = vpop.f32.mrf.mxu1  ;;  %2989 = vmatpush.bf16.msrb.mxu2 %v4827_v51 }
 0x1a3   :  { %2682 = vmatpush.bf16.msra.mxu0 %v4306_v56  ;;  %2980 = vmatpush.bf16.msrb.mxu1 %v4815_v49 }
 0x1a5   :  { %2990 = vmatpush.bf16.msrb.mxu2 %v4826_v55 }
 0x1a7   :  { %2683 = vmatpush.bf16.msra.mxu0 %v4290_v59 }
 0x1a9   :  { %v2545_v63 = vpop.f32.mrf.mxu3  ;;  %v2558_v16 = vpop.f32.mrf.mxu1  ;;  %2991 = vmatpush.bf16.msrb.mxu2 %v4825_v60 }
 0x1aa   :  { %v2546_v15 = vadd.f32 %v2545_v63, %v1837_v13 }
 0x1ab   :  { %2684 = vmatpush.bf16.msra.mxu0 %v4274_v3  ;;  %v4837_v3 = vld [vmem:[#allocation11 + $0xf0] sm:$0xff] }
 0x1ac   :  { %v5222_v17 = vadd.f32 %v2558_v16, %v2546_v15  ;;  %v4833_v15 = vld [vmem:[#allocation11 + $0xd0] sm:$0xff] }
 0x1ad   :  { %2992 = vmatpush.bf16.msrb.mxu2 %v4824_v1 }
 0x1af   :  { %2685 = vmatpush.bf16.msra.mxu0 %v4258_v7 }
 0x1b1   :  { %v2547_v41 = vpop.f32.mrf.mxu3  ;;  %v2560_v19 = vpop.f32.mrf.mxu1  ;;  %2993 = vmatpush.bf16.msrb.mxu2 %v4823_v61 }
 0x1b2   :  { %v4834_v41 = vld [vmem:[#allocation11 + $0xd8] sm:$0xff] }
 0x1b3   :  { %2686 = vmatpush.bf16.msra.mxu0 %v4242_v12 }
 0x1b6   :  { %2687 = vmatmul.bf16.vlgmr.msra.gmra.mxu0 %v5209_v38 }
 0x1b7   :  { %2999 = vmatpush.bf16.msrb.mxu0 %v4838_v39 }
 0x1bb   :  { %3000 = vmatpush.bf16.msrb.mxu0 %v4837_v3 }
 0x1bf   :  { %3001 = vmatpush.bf16.msrb.mxu0 %v4836_v5 }
 0x1c1   :  { %v2610_v23 = vpop.f32.mrf.mxu1 }
 0x1c3   :  { %3002 = vmatpush.bf16.msrb.mxu0 %v4835_v8 }
 0x1c7   :  { %3003 = vmatpush.bf16.msrb.mxu0 %v4834_v41 }
 0x1c9   :  { %v2597_v21 = vpop.f32.mrf.mxu3  ;;  %v2612_v38 = vpop.f32.mrf.mxu1 }
 0x1ca   :  { %v2598_v2 = vadd.f32 %v2597_v21, %v1838_v57  ;;  %v4831_v57 = vld [vmem:[#allocation11 + $0xc0] sm:$0xff] }
 0x1cb   :  { %3004 = vmatpush.bf16.msrb.mxu0 %v4833_v15 }
 0x1cc   :  { %v5226_v24 = vadd.f32 %v2610_v23, %v2598_v2 }
 0x1cf   :  { %3005 = vmatpush.bf16.msrb.mxu0 %v4832_v18 }
 0x1d1   :  { %v2599_v26 = vpop.f32.mrf.mxu3 }
 0x1d3   :  { %3006 = vmatpush.bf16.msrb.mxu0 %v4831_v57 }
 0x1d5   :  { %v2519_v33 = vpop.f32.mrf.mxu2 }
 0x1d6   :  { %v2520_v58 = vadd.f32 %v2519_v33, %v5219_v0 }
 0x1dd   :  { %v2521_v9 = vpop.f32.mrf.mxu2 }
 0x1e1   :  { %v2662_v47 = vpop.f32.mrf.mxu1 }
 0x1e5   :  { %v2571_v54 = vpop.f32.mrf.mxu2 }
 0x1e6   :  { %v2572_v0 = vadd.f32 %v2571_v54, %v5222_v17 }
 0x1e9   :  { %v2649_v43 = vpop.f32.mrf.mxu3  ;;  %v2664_v52 = vpop.f32.mrf.mxu1 }
 0x1ea   :  { %v2650_v44 = vadd.f32 %v2649_v43, %v1839_v36  ;;  %v4850_v36 = vld [vmem:[%s5247_s6] ss:$0 sm:$0xff]  ;;  %s5043_s6 = smov [#allocation13]  }
 0x1eb   :  { %s3040_s8 = sshll.u32 %s5043_s6, 4  ;;  %s3041_s8 = int_to_ptr.vmem [resolvable:$true] %s3040_s8 }
 0x1ec   :  { %v5229_v20 = vadd.f32 %v2662_v47, %v2650_v44 }
 0x1ed   :  { %v2573_v56 = vpop.f32.mrf.mxu2 }
 0x1f1   :  { %v2651_v32 = vpop.f32.mrf.mxu3 }
 0x1f3   :  { %v2532_v29 = vpop.f32.mrf.mxu0 }
 0x1f4   :  { %v2533_v59 = vadd.f32 %v2532_v29, %v2520_v58 }
 0x1f6   :  { %v2692_v34 = vmax.f32 %v2533_v59, 0.0 }
 0x1f7   :  { %v2623_v62 = vpop.f32.mrf.mxu2 }
 0x1f8   :  { %v2696_v63 = vpack.c.bf16 %v2692_v34, %v2692_v34  ;;  %v2624_v19 = vadd.f32 %v2623_v62, %v5226_v24 }
 0x1fa   :  { %2968 = vmatmul.bf16.vlgmr.msrb.gmra.mxu3 %v2696_v63 }
 0x1fb   :  { %v2534_v4 = vpop.f32.mrf.mxu0 }
 0x1ff   :  { %v2625_v7 = vpop.f32.mrf.mxu2 }
 0x203   :  { %v2584_v10 = vpop.f32.mrf.mxu0 }
 0x204   :  { %v2585_v50 = vadd.f32 %v2584_v10, %v2572_v0 }
 0x206   :  { %v2693_v12 = vmax.f32 %v2585_v50, 0.0 }
 0x208   :  { %v2697_v13 = vpack.c.bf16 %v2693_v12, %v2693_v12 }
 0x20a   :  { %2981 = vmatmul.bf16.vlgmr.msrb.gmra.mxu1 %v2697_v13 }
 0x20b   :  { %v2586_v16 = vpop.f32.mrf.mxu0 }
 0x213   :  { %v2636_v48 = vpop.f32.mrf.mxu0 }
 0x214   :  { %v2637_v21 = vadd.f32 %v2636_v48, %v2624_v19 }
 0x216   :  { %v2694_v17 = vmax.f32 %v2637_v21, 0.0 }
 0x217   :  { %v2675_v2 = vpop.f32.mrf.mxu2 }
 0x218   :  { %v2698_v22 = vpack.c.bf16 %v2694_v17, %v2694_v17  ;;  %v2676_v26 = vadd.f32 %v2675_v2, %v5229_v20 }
 0x21a   :  { %2994 = vmatmul.bf16.vlgmr.msrb.gmra.mxu2 %v2698_v22 }
 0x21b   :  { %v2638_v23 = vpop.f32.mrf.mxu0 }
 0x21f   :  { %v2677_v25 = vpop.f32.mrf.mxu2 }
 0x233   :  { %v2688_v27 = vpop.f32.mrf.mxu0 }
 0x234   :  { %v2689_v28 = vadd.f32 %v2688_v27, %v2676_v26 }
 0x236   :  { %v2695_v38 = vmax.f32 %v2689_v28, 0.0 }
 0x238   :  { %v2699_v30 = vpack.c.bf16 %v2695_v38, %v2695_v38 }
 0x23a   :  { %3007 = vmatmul.bf16.vlgmr.msrb.gmra.mxu0 %v2699_v30 }
 0x23b   :  { %v2690_v31 = vpop.f32.mrf.mxu0 }
 0x27d   :  { %v2969_v53 = vpop.f32.mrf.mxu3 }
 0x27e   :  { %v2970_v37 = vadd.f32 %v4850_v36, %v2969_v53 }
 0x285   :  { %v2971_v24 = vpop.f32.mrf.mxu3 }
 0x287   :  { %v2982_v42 = vpop.f32.mrf.mxu1 }
 0x288   :  { %v2983_v40 = vadd.f32 %v2982_v42, %v2970_v37 }
 0x28f   :  { %v2984_v6 = vpop.f32.mrf.mxu1 }
 0x29d   :  { %v2995_v35 = vpop.f32.mrf.mxu2 }
 0x29e   :  { %v2996_v43 = vadd.f32 %v2995_v35, %v2983_v40 }
 0x2a5   :  { %v2997_v33 = vpop.f32.mrf.mxu2 }
 0x2b7   :  { %v3008_v44 = vpop.f32.mrf.mxu0 }
 0x2b8   :  { %v3009_v45 = vadd.f32 %v3008_v44, %v2996_v43 }
 0x2ba   :  { %3012 = vmax.xlane.f32.xlu0 %v3009_v45 }
 0x2bf   :  { %v3010_v46 = vpop.f32.mrf.mxu0 }
 0x32d   :  { %v3013_v47 = vpop.xlane.xlu0 %3012 }
 0x32e   :  { %v3014_v9 = vsub.f32 %v3009_v45, %v3013_v47 }
 0x330   :  { %v3015_v20 = vmul.f32 1.442695, %v3014_v9 }
 0x332   :  { %4851 = vpow2.f32 %v3015_v20 }
 0x338   :  { %v4852_v14 = vpop.eup %4851 }
 0x339   :  { %3017 = vadd.xlane.f32.xlu0 %v4852_v14 }
 0x3ac   :  { %v3018_v11 = vpop.xlane.xlu0 %3017 }
 0x3ad   :  { %4853 = vrcp.f32 %v3018_v11  ;;  %v3030_v52 = vand.u32 2147483648, %v3018_v11  ;;  %v3028_v55 = vand.u32 2147483647, %v3018_v11  ;;  %vm3024_vm2 = vweird.f32 %v3018_v11 }
 0x3af   :  { %v3031_v56 = vor.u32 1.1754944e-38, %v3030_v52  ;;  %vm3029_vm4 = vcmp.eq.f32.partialorder %v3028_v55, 8.507059e+37 }
 0x3b3   :  { %v4854_v32 = vpop.eup %4853 }
 0x3b4   :  { %v3020_v49 = vmul.f32 %v4854_v32, %v3018_v11  ;;  %vm3025_vm1 = vweird.f32 %v4854_v32 }
 0x3b5   :  { %vm3026_vm3 = vmor %vm3024_vm2, %vm3025_vm1 }
 0x3b6   :  { %v3021_v51 = vsub.f32 1.0, %v3020_v49 }
 0x3b8   :  { %v3022_v54 = vmul.f32 %v4854_v32, %v3021_v51 }
 0x3ba   :  { %v3023_v60 = vadd.f32 %v4854_v32, %v3022_v54 }
 0x3bc   :  { %v3027_v58 = vsel %vm3026_vm3, %v4854_v32, %v3023_v60 }
 0x3bd   :  { %v3032_v1 = vsel %vm3029_vm4, %v3031_v56, %v3027_v58 }
 0x3be   :  { %v3033_v29 = vmul.f32 %v4852_v14, %v3032_v1 }
 0x3c0   :  { %3034 = vst [vmem:[#allocation13] sm:$0xff] %v3033_v29 }
 0x3c1   :  { %3045 = dma.vmem_to_hbm [thread:$0]  %s3041_s8, 128, %s3043_s11, [#allocation4]  }
 0x3c2   :  { %5031 = dma.done.wait [#allocation4], 128  }
 0x3c3   :  { %5032 = vsyncadd [#allocation4], 4294967168 }
 0x3c4   :  { %3050 = vsyncpa [#allocation3], 1 }
 0x3c5   :  { %3051 = vsyncpa [#allocation6], 1 }
 0x3c6   :  { %3052 = vsyncpa [#allocation9], 1 }
 0x3c7   :  { %3053 = vsyncpa [#allocation12], 1 }
 0x3c8   :  { %3054 = vsyncpa [#allocation4], 1 }

</bundles_post_ra>
